<compile_context>
chip_gen: v7x
topology: tpu7x:2x2x1
jax: 0.10.0
libtpu: 0.0.40
codegen_flags: <defaults>
</compile_context>

<pallas_src>
import functools

import jax
import jax.numpy as jnp
from jax import lax
from jax.experimental import pallas as pl
from jax.experimental.pallas import tpu as pltpu

EPS = 1e-12                              # matches torch.nn.functional.normalize eps
_VMEM_INPUT_BUDGET = 16 * 1024 * 1024    # budget for double-buffered input blocks


def _round_up(x, m):
    return ((x + m - 1) // m) * m


def _inv_l2_rows(x):
    # 1 / clamp_min(||x||_2, eps) per row: a single exact EUP rsqrt on a
    # (tile_b, 1) column; callers broadcast-multiply.
    ss = jnp.sum(x * x, axis=-1, keepdims=True)
    return lax.rsqrt(jnp.maximum(ss, EPS * EPS))


def _transh_kernel(h_ref, t_ref, r_ref, w_ref, score_ref, *, lane_dense):
    h = h_ref[...]          # (tile_b, D)
    t = t_ref[...]
    r = r_ref[...]
    w = w_ref[...]

    # Hyperplane projection.  Algebraically identical (including the eps clamp)
    # to normalizing w first:
    #   e - <e, w_n> w_n  ==  e - (<e, w> / max(<w, w>, eps^2)) w
    inv_ww = 1.0 / jnp.maximum(jnp.sum(w * w, axis=-1, keepdims=True), EPS * EPS)
    h = h - (jnp.sum(h * w, axis=-1, keepdims=True) * inv_ww) * w
    t = t - (jnp.sum(t * w, axis=-1, keepdims=True) * inv_ww) * w

    # _calc with norm_flag=True (eps-clamped L2 normalize).
    h = h * _inv_l2_rows(h)
    r = r * _inv_l2_rows(r)
    t = t * _inv_l2_rows(t)

    # L1 score along the embedding dim -> (tile_b, 1) column.  Reduce along
    # lanes first; only the thin column is relaid out for the lane-dense store.
    score = jnp.sum(jnp.abs(h + r - t), axis=-1, keepdims=True)
    if lane_dense:
        score_ref[...] = jnp.transpose(score)    # (1, tile_b): unmasked stores
    else:
        score_ref[...] = score                   # (tile_b, 1) fallback (huge D)


def _choose_tile_b(B, D, requested):
    # Cap by VMEM bytes: 4 inputs x 2 pipeline buffers x D x 4B per row.
    bytes_per_row = 4 * 2 * D * 4
    cap_vmem = max(8, (_VMEM_INPUT_BUDGET // bytes_per_row) // 8 * 8)
    tile = min(int(requested), cap_vmem)
    # Keep the grid >= 2 steps (when the batch allows) so v7x's two TensorCores
    # both get work via the 'parallel' grid axis.
    if B > 128:
        tile = min(tile, max(128, _round_up(pl.cdiv(B, 2), 128)))
    # Never (much) larger than the batch itself.
    tile = min(tile, _round_up(B, 128))
    # Multiple of 128 -> lane-dense (unmasked) score stores; otherwise fall
    # back to a multiple of 8 (only triggers for very large D).
    if tile >= 128:
        tile = (tile // 128) * 128
    else:
        tile = max(8, (tile // 8) * 8)
    return tile


def transh_score(h, t, r, w, *, tile_b=2048):
    """h, t, r, w: (B, D) float32.  Returns (B,) float32 TransH scores."""
    B, D = h.shape
    tile = _choose_tile_b(B, D, tile_b)
    grid_b = pl.cdiv(B, tile)
    b_out = grid_b * tile
    lane_dense = (tile % 128 == 0)

    emb_spec = pl.BlockSpec((tile, D), lambda i: (i, 0))
    if lane_dense:
        out_shape = jax.ShapeDtypeStruct((1, b_out), jnp.float32)
        out_spec = pl.BlockSpec((1, tile), lambda i: (0, i))
    else:
        out_shape = jax.ShapeDtypeStruct((b_out, 1), jnp.float32)
        out_spec = pl.BlockSpec((tile, 1), lambda i: (i, 0))

    # VMEM limit derived from the actual footprint (double-buffered inputs +
    # generous headroom for in-kernel temporaries), capped below v7x's 64 MiB.
    per_block = tile * D * 4
    vmem_limit = int(min(56 * 1024 * 1024, max(24 * 1024 * 1024, 24 * per_block)))

    out = pl.pallas_call(
        functools.partial(_transh_kernel, lane_dense=lane_dense),
        out_shape=out_shape,
        grid_spec=pltpu.PrefetchScalarGridSpec(
            num_scalar_prefetch=0,
            grid=(grid_b,),
            in_specs=[emb_spec, emb_spec, emb_spec, emb_spec],
            out_specs=out_spec,
        ),
        compiler_params=pltpu.CompilerParams(
            dimension_semantics=("parallel",),
            vmem_limit_bytes=vmem_limit,
            allow_input_fusion=[True, True, True, True],
        ),
    )(h, t, r, w)
    return out.reshape(-1)[:B]


@jax.jit
def _transh_forward(ent_emb, rel_emb, norm_vec, batch_h, batch_t, batch_r):
    # Gathers sit in the same XLA module as the pallas_call; allow_input_fusion
    # lets XLA fuse them into the kernel's input reads where supported.
    # TODO(synk): a fully fused in-kernel gather (scalar-prefetched indices in
    # SMEM + manual row DMAs from HBM tables) would remove the remaining extra
    # HBM pass when XLA declines to fuse the gather.
    h = jnp.take(ent_emb, batch_h, axis=0)
    t = jnp.take(ent_emb, batch_t, axis=0)
    r = jnp.take(rel_emb, batch_r, axis=0)
    w = jnp.take(norm_vec, batch_r, axis=0)
    return transh_score(h, t, r, w)


class TransHJax:
    """Deterministically initialized TransH (margin=None -> xavier_uniform)."""

    def __init__(self, ent_tot, rel_tot, dim=100, key=jax.random.PRNGKey(0)):
        self.ent_tot, self.rel_tot, self.dim = ent_tot, rel_tot, dim
        k1, k2, k3 = jax.random.split(key, 3)

        def xavier(k, fan_out, fan_in):
            a = (6.0 / (fan_in + fan_out)) ** 0.5
            return jax.random.uniform(k, (fan_out, fan_in), jnp.float32, -a, a)

        self.ent_embeddings = xavier(k1, ent_tot, dim)
        self.rel_embeddings = xavier(k2, rel_tot, dim)
        self.norm_vector = xavier(k3, rel_tot, dim)

    def forward(self, data):
        # mode='normal' path (h/t/r all have the same batch length);
        # margin=None -> score returned directly (margin_flag=False).
        return _transh_forward(
            self.ent_embeddings, self.rel_embeddings, self.norm_vector,
            data["batch_h"], data["batch_t"], data["batch_r"])


def _reference(model, data):
    def l2n(x):
        n = jnp.sqrt(jnp.sum(x * x, axis=-1, keepdims=True))
        return x / jnp.maximum(n, EPS)

    h = jnp.take(model.ent_embeddings, data["batch_h"], axis=0)
    t = jnp.take(model.ent_embeddings, data["batch_t"], axis=0)
    r = jnp.take(model.rel_embeddings, data["batch_r"], axis=0)
    w = jnp.take(model.norm_vector, data["batch_r"], axis=0)
    w = l2n(w)
    h = h - jnp.sum(h * w, -1, keepdims=True) * w
    t = t - jnp.sum(t * w, -1, keepdims=True) * w
    h, r, t = l2n(h), l2n(r), l2n(t)
    return jnp.sum(jnp.abs(h + r - t), axis=-1)


if __name__ == "__main__":
    ent_tot, rel_tot, dim, batch = 16, 4, 100, 8   # dim=100 = module default
    key = jax.random.PRNGKey(0)
    model = TransHJax(ent_tot, rel_tot, dim=dim, key=key)

    kh, kt, kr = jax.random.split(jax.random.PRNGKey(1), 3)
    data = {
        "batch_h": jax.random.randint(kh, (batch,), 0, ent_tot),
        "batch_t": jax.random.randint(kt, (batch,), 0, ent_tot),
        "batch_r": jax.random.randint(kr, (batch,), 0, rel_tot),
        "mode": "normal",
    }

    score = jax.block_until_ready(model.forward(data))
    ref = jax.block_until_ready(_reference(model, data))
    assert score.shape == (batch,)
    assert jnp.allclose(score, ref, atol=1e-4, rtol=1e-4), (score, ref)
    print("KERNEL_OK")
</pallas_src>

<mosaic_0001>
module attributes {stable_mosaic.version = 11 : i64} {
  func.func @_transh_kernel(%arg0: i32, %arg1: memref<128x100xf32, #tpu.memory_space<vmem>>, %arg2: memref<128x100xf32, #tpu.memory_space<vmem>>, %arg3: memref<128x100xf32, #tpu.memory_space<vmem>>, %arg4: memref<128x100xf32, #tpu.memory_space<vmem>>, %arg5: memref<1x128xf32, #tpu.memory_space<vmem>>) attributes {dimension_semantics = [#tpu.dimension_semantics<parallel>], iteration_bounds = array<i64: 1>, scalar_prefetch = 0 : i64, scratch_operands = 0 : i64, tpu.core_type = #tpu.core_type<tc>, window_params = [{transform_indices = @transform_0, window_bounds = array<i64: 128, 100>}, {transform_indices = @transform_1, window_bounds = array<i64: 128, 100>}, {transform_indices = @transform_2, window_bounds = array<i64: 128, 100>}, {transform_indices = @transform_3, window_bounds = array<i64: 128, 100>}, {transform_indices = @transform_4, window_bounds = array<i64: 1, 128>}]} {
    %c0 = arith.constant 0 : index
    %c0_0 = arith.constant 0 : index
    %0 = vector.load %arg1[%c0, %c0_0] : memref<128x100xf32, #tpu.memory_space<vmem>>, vector<128x100xf32>
    %c0_1 = arith.constant 0 : index
    %c0_2 = arith.constant 0 : index
    %1 = vector.load %arg2[%c0_1, %c0_2] : memref<128x100xf32, #tpu.memory_space<vmem>>, vector<128x100xf32>
    %c0_3 = arith.constant 0 : index
    %c0_4 = arith.constant 0 : index
    %2 = vector.load %arg3[%c0_3, %c0_4] : memref<128x100xf32, #tpu.memory_space<vmem>>, vector<128x100xf32>
    %c0_5 = arith.constant 0 : index
    %c0_6 = arith.constant 0 : index
    %3 = vector.load %arg4[%c0_5, %c0_6] : memref<128x100xf32, #tpu.memory_space<vmem>>, vector<128x100xf32>
    %4 = arith.mulf %3, %3 : vector<128x100xf32>
    %cst = arith.constant dense<0.000000e+00> : vector<128xf32>
    %5 = vector.multi_reduction <add>, %4, %cst [1] : vector<128x100xf32> to vector<128xf32>
    %6 = vector.shape_cast %5 : vector<128xf32> to vector<128x1xf32>
    %cst_7 = arith.constant 1.000000e-24 : f32
    %7 = vector.broadcast %cst_7 : f32 to vector<128x1xf32>
    %8 = arith.maximumf %6, %7 : vector<128x1xf32>
    %cst_8 = arith.constant 1.000000e+00 : f32
    %9 = vector.broadcast %cst_8 : f32 to vector<128x1xf32>
    %10 = arith.divf %9, %8 : vector<128x1xf32>
    %11 = arith.mulf %0, %3 : vector<128x100xf32>
    %cst_9 = arith.constant dense<0.000000e+00> : vector<128xf32>
    %12 = vector.multi_reduction <add>, %11, %cst_9 [1] : vector<128x100xf32> to vector<128xf32>
    %13 = vector.shape_cast %12 : vector<128xf32> to vector<128x1xf32>
    %14 = arith.mulf %13, %10 : vector<128x1xf32>
    %15 = vector.broadcast %14 : vector<128x1xf32> to vector<128x100xf32>
    %16 = arith.mulf %15, %3 : vector<128x100xf32>
    %17 = arith.subf %0, %16 : vector<128x100xf32>
    %18 = arith.mulf %1, %3 : vector<128x100xf32>
    %cst_10 = arith.constant dense<0.000000e+00> : vector<128xf32>
    %19 = vector.multi_reduction <add>, %18, %cst_10 [1] : vector<128x100xf32> to vector<128xf32>
    %20 = vector.shape_cast %19 : vector<128xf32> to vector<128x1xf32>
    %21 = arith.mulf %20, %10 : vector<128x1xf32>
    %22 = vector.broadcast %21 : vector<128x1xf32> to vector<128x100xf32>
    %23 = arith.mulf %22, %3 : vector<128x100xf32>
    %24 = arith.subf %1, %23 : vector<128x100xf32>
    %25 = arith.mulf %17, %17 : vector<128x100xf32>
    %cst_11 = arith.constant dense<0.000000e+00> : vector<128xf32>
    %26 = vector.multi_reduction <add>, %25, %cst_11 [1] : vector<128x100xf32> to vector<128xf32>
    %27 = vector.shape_cast %26 : vector<128xf32> to vector<128x1xf32>
    %cst_12 = arith.constant 1.000000e-24 : f32
    %28 = vector.broadcast %cst_12 : f32 to vector<128x1xf32>
    %29 = arith.maximumf %27, %28 : vector<128x1xf32>
    %30 = math.rsqrt %29 : vector<128x1xf32>
    %31 = vector.broadcast %30 : vector<128x1xf32> to vector<128x100xf32>
    %32 = arith.mulf %17, %31 : vector<128x100xf32>
    %33 = arith.mulf %2, %2 : vector<128x100xf32>
    %cst_13 = arith.constant dense<0.000000e+00> : vector<128xf32>
    %34 = vector.multi_reduction <add>, %33, %cst_13 [1] : vector<128x100xf32> to vector<128xf32>
    %35 = vector.shape_cast %34 : vector<128xf32> to vector<128x1xf32>
    %cst_14 = arith.constant 1.000000e-24 : f32
    %36 = vector.broadcast %cst_14 : f32 to vector<128x1xf32>
    %37 = arith.maximumf %35, %36 : vector<128x1xf32>
    %38 = math.rsqrt %37 : vector<128x1xf32>
    %39 = vector.broadcast %38 : vector<128x1xf32> to vector<128x100xf32>
    %40 = arith.mulf %2, %39 : vector<128x100xf32>
    %41 = arith.mulf %24, %24 : vector<128x100xf32>
    %cst_15 = arith.constant dense<0.000000e+00> : vector<128xf32>
    %42 = vector.multi_reduction <add>, %41, %cst_15 [1] : vector<128x100xf32> to vector<128xf32>
    %43 = vector.shape_cast %42 : vector<128xf32> to vector<128x1xf32>
    %cst_16 = arith.constant 1.000000e-24 : f32
    %44 = vector.broadcast %cst_16 : f32 to vector<128x1xf32>
    %45 = arith.maximumf %43, %44 : vector<128x1xf32>
    %46 = math.rsqrt %45 : vector<128x1xf32>
    %47 = vector.broadcast %46 : vector<128x1xf32> to vector<128x100xf32>
    %48 = arith.mulf %24, %47 : vector<128x100xf32>
    %49 = arith.addf %32, %40 : vector<128x100xf32>
    %50 = arith.subf %49, %48 : vector<128x100xf32>
    %51 = math.absf %50 : vector<128x100xf32>
    %cst_17 = arith.constant dense<0.000000e+00> : vector<128xf32>
    %52 = vector.multi_reduction <add>, %51, %cst_17 [1] : vector<128x100xf32> to vector<128xf32>
    %53 = vector.shape_cast %52 : vector<128xf32> to vector<128x1xf32>
    %54 = tpu.transpose %53, [1, 0] : vector<128x1xf32> -> vector<1x128xf32>
    %c0_18 = arith.constant 0 : index
    %c0_19 = arith.constant 0 : index
    %55 = vector.load %arg5[%c0_18, %c0_19] : memref<1x128xf32, #tpu.memory_space<vmem>>, vector<1x128xf32>
    tpu.vector_store %arg5[%c0_18, %c0_19], %54 {strides = array<i32>} : memref<1x128xf32, #tpu.memory_space<vmem>>, vector<1x128xf32>,
    return
  }
  func.func @transform_0(%arg0: i32) -> (i32, i32) {
    %c0_i32 = arith.constant 0 : i32
    %c0_i32_0 = arith.constant 0 : i32
    return %arg0, %c0_i32 : i32, i32
  }
  func.func @transform_1(%arg0: i32) -> (i32, i32) {
    %c0_i32 = arith.constant 0 : i32
    %c0_i32_0 = arith.constant 0 : i32
    return %arg0, %c0_i32 : i32, i32
  }
  func.func @transform_2(%arg0: i32) -> (i32, i32) {
    %c0_i32 = arith.constant 0 : i32
    %c0_i32_0 = arith.constant 0 : i32
    return %arg0, %c0_i32 : i32, i32
  }
  func.func @transform_3(%arg0: i32) -> (i32, i32) {
    %c0_i32 = arith.constant 0 : i32
    %c0_i32_0 = arith.constant 0 : i32
    return %arg0, %c0_i32 : i32, i32
  }
  func.func @transform_4(%arg0: i32) -> (i32, i32) {
    %c0_i32 = arith.constant 0 : i32
    %c0_i32_0 = arith.constant 0 : i32
    return %c0_i32, %arg0 : i32, i32
  }
}

</mosaic_0001>

<bundles_post_ra>
// kernel: _transh_forward.2
= control target key start
LH: loop header
LB: loop body
LE: loop exit
PB: predicated region body
PF: predicated region fallthrough
CT: control target
= control target key end

     0   :  { %s3017_s0 = inlined_call_operand.vmem [shape: f32[8,100], index: 0, kind: input, shape index: {}]   ;;  %s3018_s1 = inlined_call_operand.vmem [shape: f32[8,100], index: 1, kind: input, shape index: {}]   ;;  %s3019_s2 = inlined_call_operand.vmem [shape: f32[8,100], index: 2, kind: input, shape index: {}]   ;;  %s3020_s3 = inlined_call_operand.vmem [shape: f32[8,100], index: 3, kind: input, shape index: {}]   ;;  %s3021_s4 = inlined_call_operand.<no memory space> [shape: f32[], index: 4, kind: input, shape index: {}]   ;;  %s3022_s5 = inlined_call_operand.vmem [shape: pred[8], index: 5, kind: input, shape index: {}]   ;;  %s3023_s6 = inlined_call_operand.vmem [shape: pred[8], index: 6, kind: input, shape index: {}]   ;;  %s3024_s7 = inlined_call_operand.vmem [shape: pred[8], index: 7, kind: input, shape index: {}]   ;;  %s3025_s8 = inlined_call_operand.vmem [shape: f32[1,128], index: 8, kind: output, shape index: {}]  }
   0x1   :  { %v2099_v0 = vstv %s3021_s4 }
   0x2   :  { %v64_v1 = vld [vmem:[%s3024_s7] ss:$0 sm:$0xff]  ;;  %vm1133_vm2 = vcmask 818176  }
   0x3   :  { %v67_v2 = vand.u32 255, %v64_v1  ;;  %v813_v3 = vld [vmem:[%s3022_s5] ss:$0 sm:$0xff] }
   0x4   :  { %v2107_v4 = vand.u32 255, %v813_v3  ;;  %v289_v5 = vld [vmem:[%s3023_s6] ss:$0 sm:$0xff] }
   0x5   :  { %70 = vbcast.lane.b32.xlu1 %v67_v2, 272  ;;  %39 = vbcast.lane.b32.xlu0 %v67_v2, 256  ;;  %v292_v6 = vand.u32 255, %v289_v5  ;;  %v798_v23 = vld [vmem:[%s3017_s0] sm:$0xff] }
   0x6   :  { %v33_v48 = vld [vmem:[%s3020_s3] sm:$0xff] }
   0x7   :  { %v288_v52 = vld [vmem:[%s3019_s2] sm:$0xff] }
   0x9   :  { %86 = vbcast.lane.b32.xlu1 %v67_v2, 280  ;;  %54 = vbcast.lane.b32.xlu0 %v67_v2, 264 }
   0xd   :  { %118 = vbcast.lane.b32.xlu1 %v67_v2, 296  ;;  %102 = vbcast.lane.b32.xlu0 %v67_v2, 288 }
  0x11   :  { %150 = vbcast.lane.b32.xlu1 %v67_v2, 312  ;;  %134 = vbcast.lane.b32.xlu0 %v67_v2, 304 }
  0x15   :  { %182 = vbcast.lane.b32.xlu1 %v67_v2, 328  ;;  %166 = vbcast.lane.b32.xlu0 %v67_v2, 320 }
  0x19   :  { %214 = vbcast.lane.b32.xlu1 %v67_v2, 344  ;;  %198 = vbcast.lane.b32.xlu0 %v67_v2, 336 }
  0x1d   :  { %246 = vbcast.lane.b32.xlu1 %v67_v2, 360  ;;  %230 = vbcast.lane.b32.xlu0 %v67_v2, 352 }
  0x21   :  { %278 = vbcast.lane.b32.xlu1 %v67_v2, 376  ;;  %262 = vbcast.lane.b32.xlu0 %v67_v2, 368 }
  0x25   :  { %819 = vbcast.lane.b32.xlu1 %v2107_v4, 264  ;;  %804 = vbcast.lane.b32.xlu0 %v2107_v4, 256 }
  0x29   :  { %851 = vbcast.lane.b32.xlu1 %v2107_v4, 280  ;;  %835 = vbcast.lane.b32.xlu0 %v2107_v4, 272 }
  0x2d   :  { %883 = vbcast.lane.b32.xlu1 %v2107_v4, 296  ;;  %867 = vbcast.lane.b32.xlu0 %v2107_v4, 288 }
  0x31   :  { %915 = vbcast.lane.b32.xlu1 %v2107_v4, 312  ;;  %899 = vbcast.lane.b32.xlu0 %v2107_v4, 304 }
  0x35   :  { %931 = vbcast.lane.b32.xlu1 %v2107_v4, 320  ;;  %294 = vbcast.lane.b32.xlu0 %v292_v6, 256 }
  0x39   :  { %947 = vbcast.lane.b32.xlu1 %v2107_v4, 328  ;;  %309 = vbcast.lane.b32.xlu0 %v292_v6, 264 }
  0x3d   :  { %963 = vbcast.lane.b32.xlu1 %v2107_v4, 336  ;;  %325 = vbcast.lane.b32.xlu0 %v292_v6, 272 }
  0x41   :  { %979 = vbcast.lane.b32.xlu1 %v2107_v4, 344  ;;  %341 = vbcast.lane.b32.xlu0 %v292_v6, 280 }
  0x45   :  { %995 = vbcast.lane.b32.xlu1 %v2107_v4, 352  ;;  %357 = vbcast.lane.b32.xlu0 %v292_v6, 288 }
  0x49   :  { %1011 = vbcast.lane.b32.xlu1 %v2107_v4, 360  ;;  %373 = vbcast.lane.b32.xlu0 %v292_v6, 296 }
  0x4d   :  { %1027 = vbcast.lane.b32.xlu1 %v2107_v4, 368  ;;  %389 = vbcast.lane.b32.xlu0 %v292_v6, 304 }
  0x51   :  { %1043 = vbcast.lane.b32.xlu1 %v2107_v4, 376  ;;  %405 = vbcast.lane.b32.xlu0 %v292_v6, 312 }
  0x55   :  { %437 = vbcast.lane.b32.xlu1 %v292_v6, 328  ;;  %421 = vbcast.lane.b32.xlu0 %v292_v6, 320 }
  0x59   :  { %469 = vbcast.lane.b32.xlu1 %v292_v6, 344  ;;  %453 = vbcast.lane.b32.xlu0 %v292_v6, 336 }
  0x5d   :  { %501 = vbcast.lane.b32.xlu1 %v292_v6, 360  ;;  %485 = vbcast.lane.b32.xlu0 %v292_v6, 352 }
  0x61   :  { %517 = vbcast.lane.b32.xlu0 %v292_v6, 368  ;;  %533 = vbcast.lane.b32.xlu1 %v292_v6, 376 }
  0x77   :  { %v2128_v7 = vpop.permute.xlu1 %70  ;;  %v2130_v8 = vpop.permute.xlu0 %39 }
  0x78   :  { %vm43_vm7 = vcmp.ne.s32.totalorder %v2130_v8, 0  ;;  %vm74_vm13 = vcmp.ne.s32.totalorder %v2128_v7, 0 }
  0x79   :  { %v2217_v56 = vsel %vm43_vm7, %v33_v48, %v2099_v0  ;;  %v2242_v7 = vsel %vm74_vm13, 0, %v2099_v0 }
  0x7b   :  { %v2132_v9 = vpop.permute.xlu1 %86  ;;  %v2134_v10 = vpop.permute.xlu0 %54 }
  0x7c   :  { %vm58_vm10 = vcmp.ne.s32.totalorder %v2134_v10, 0 }
  0x7d   :  { %v2228_v63 = vsel %vm58_vm10, 0, %v2099_v0 }
  0x7f   :  { %v2136_v11 = vpop.permute.xlu1 %118  ;;  %v2138_v12 = vpop.permute.xlu0 %102 }
  0x83   :  { %v2140_v13 = vpop.permute.xlu1 %150  ;;  %v2142_v14 = vpop.permute.xlu0 %134 }
  0x84   :  { %vm138_vm10 = vcmp.ne.s32.totalorder %v2142_v14, 0 }
  0x85   :  { %v2318_v14 = vsel %vm138_vm10, 0, %v2099_v0 }
  0x87   :  { %v2144_v15 = vpop.permute.xlu1 %182  ;;  %v2146_v16 = vpop.permute.xlu0 %166 }
  0x8b   :  { %v2148_v17 = vpop.permute.xlu1 %214  ;;  %v2150_v18 = vpop.permute.xlu0 %198 }
  0x8f   :  { %v2152_v19 = vpop.permute.xlu1 %246  ;;  %v2154_v20 = vpop.permute.xlu0 %230 }
  0x90   :  { %vm234_vm10 = vcmp.ne.s32.totalorder %v2154_v20, 0 }
  0x93   :  { %v2156_v21 = vpop.permute.xlu1 %278  ;;  %v2158_v22 = vpop.permute.xlu0 %262 }
  0x97   :  { %v820_v24 = vpop.permute.xlu1 %819  ;;  %v805_v25 = vpop.permute.xlu0 %804 }
  0x98   :  { %vm823_vm0 = vcmp.ne.s32.totalorder %v820_v24, 0  ;;  %vm808_vm1 = vcmp.ne.s32.totalorder %v805_v25, 0 }
  0x99   :  { %v2164_v26 = vsel %vm823_vm0, 0, %v2099_v0  ;;  %v2167_v27 = vsel %vm808_vm1, %v798_v23, %v2099_v0  ;;  %vm90_vm1 = vcmp.ne.s32.totalorder %v2132_v9, 0 }
  0x9a   :  { %v1117_v28 = vmul.f32 %v2167_v27, %v2167_v27  ;;  %v1118_v29 = vmul.f32 %v2164_v26, %v2164_v26  ;;  %v1230_v60 = vmul.f32 %v2167_v27, %v2217_v56  ;;  %v1231_v6 = vmul.f32 %v2164_v26, %v2228_v63 }
  0x9b   :  { %v852_v30 = vpop.permute.xlu1 %851  ;;  %v836_v31 = vpop.permute.xlu0 %835 }
  0x9c   :  { %vm855_vm3 = vcmp.ne.s32.totalorder %v852_v30, 0  ;;  %vm839_vm4 = vcmp.ne.s32.totalorder %v836_v31, 0  ;;  %v1134_v32 = vsel %vm1133_vm2, %v1117_v28, 0.0  ;;  %v1137_v33 = vsel %vm1133_vm2, %v1118_v29, 0.0 }
  0x9d   :  { %v2176_v34 = vsel %vm855_vm3, 0, %v2099_v0  ;;  %v2179_v35 = vsel %vm839_vm4, 0, %v2099_v0  ;;  %1135 = vadd.xlane.f32.xlu0 %v1134_v32  ;;  %1138 = vadd.xlane.f32.xlu1 %v1137_v33  ;;  %v1246_v3 = vsel %vm1133_vm2, %v1230_v60, 0.0  ;;  %v1249_v25 = vsel %vm1133_vm2, %v1231_v6, 0.0 }
  0x9e   :  { %v1119_v36 = vmul.f32 %v2179_v35, %v2179_v35  ;;  %v1120_v37 = vmul.f32 %v2176_v34, %v2176_v34  ;;  %v1232_v28 = vmul.f32 %v2179_v35, %v2242_v7  ;;  %vm106_vm4 = vcmp.ne.s32.totalorder %v2138_v12, 0 }
  0x9f   :  { %v884_v38 = vpop.permute.xlu1 %883  ;;  %v868_v39 = vpop.permute.xlu0 %867  ;;  %v2280_v12 = vsel %vm106_vm4, 0, %v2099_v0  ;;  %vm186_vm4 = vcmp.ne.s32.totalorder %v2144_v15, 0 }
  0xa0   :  { %vm887_vm5 = vcmp.ne.s32.totalorder %v884_v38, 0  ;;  %vm871_vm6 = vcmp.ne.s32.totalorder %v868_v39, 0  ;;  %v1140_v40 = vsel %vm1133_vm2, %v1119_v36, 0.0  ;;  %v1143_v43 = vsel %vm1133_vm2, %v1120_v37, 0.0 }
  0xa1   :  { %v2187_v41 = vsel %vm887_vm5, 0, %v2099_v0  ;;  %v2190_v42 = vsel %vm871_vm6, 0, %v2099_v0  ;;  %1141 = vadd.xlane.f32.xlu0 %v1140_v40  ;;  %v1252_v36 = vsel %vm1133_vm2, %v1232_v28, 0.0 }
  0xa2   :  { %v1121_v44 = vmul.f32 %v2190_v42, %v2190_v42  ;;  %v1122_v45 = vmul.f32 %v2187_v41, %v2187_v41 }
  0xa3   :  { %v916_v46 = vpop.permute.xlu1 %915  ;;  %v900_v47 = vpop.permute.xlu0 %899 }
  0xa4   :  { %vm919_vm8 = vcmp.ne.s32.totalorder %v916_v46, 0  ;;  %vm903_vm9 = vcmp.ne.s32.totalorder %v900_v47, 0  ;;  %v1146_v49 = vsel %vm1133_vm2, %v1121_v44, 0.0  ;;  %v1149_v53 = vsel %vm1133_vm2, %v1122_v45, 0.0 }
  0xa5   :  { %v2203_v50 = vsel %vm919_vm8, 0, %v2099_v0  ;;  %v2206_v51 = vsel %vm903_vm9, 0, %v2099_v0  ;;  %1144 = vadd.xlane.f32.xlu0 %v1143_v43  ;;  %1147 = vadd.xlane.f32.xlu1 %v1146_v49  ;;  %v2266_v43 = vsel %vm90_vm1, 0, %v2099_v0  ;;  %vm122_vm8 = vcmp.ne.s32.totalorder %v2136_v11, 0 }
  0xa6   :  { %v1123_v54 = vmul.f32 %v2206_v51, %v2206_v51  ;;  %v1124_v55 = vmul.f32 %v2203_v50, %v2203_v50  ;;  %v1233_v46 = vmul.f32 %v2176_v34, %v2266_v43  ;;  %v2304_v6 = vsel %vm122_vm8, 0, %v2099_v0 }
  0xa7   :  { %v932_v57 = vpop.permute.xlu1 %931  ;;  %v295_v58 = vpop.permute.xlu0 %294  ;;  %vm218_vm8 = vcmp.ne.s32.totalorder %v2148_v17, 0 }
  0xa8   :  { %vm298_vm11 = vcmp.ne.s32.totalorder %v295_v58, 0  ;;  %v1152_v59 = vsel %vm1133_vm2, %v1123_v54, 0.0  ;;  %vm935_vm12 = vcmp.ne.s32.totalorder %v932_v57, 0  ;;  %v1155_v62 = vsel %vm1133_vm2, %v1124_v55, 0.0 }
  0xa9   :  { %v2224_v61 = vsel %vm298_vm11, %v288_v52, %v2099_v0  ;;  %1150 = vadd.xlane.f32.xlu0 %v1149_v53  ;;  %1153 = vadd.xlane.f32.xlu1 %v1152_v59  ;;  %v2237_v8 = vsel %vm935_vm12, 0, %v2099_v0  ;;  %v1255_v53 = vsel %vm1133_vm2, %v1233_v46, 0.0  ;;  %v1234_v54 = vmul.f32 %v2190_v42, %v2280_v12 }
  0xaa   :  { %v1342_v5 = vmul.f32 %v2167_v27, %v2224_v61  ;;  %v1125_v10 = vmul.f32 %v2237_v8, %v2237_v8 }
  0xab   :  { %v948_v1 = vpop.permute.xlu1 %947  ;;  %v310_v2 = vpop.permute.xlu0 %309 }
  0xac   :  { %vm951_vm14 = vcmp.ne.s32.totalorder %v948_v1, 0  ;;  %vm313_vm15 = vcmp.ne.s32.totalorder %v310_v2, 0  ;;  %v1358_v24 = vsel %vm1133_vm2, %v1342_v5, 0.0  ;;  %v1158_v32 = vsel %vm1133_vm2, %v1125_v10, 0.0 }
  0xad   :  { %1156 = vadd.xlane.f32.xlu1 %v1155_v62  ;;  %1247 = vadd.xlane.f32.xlu0 %v1246_v3  ;;  %v2249_v29 = vsel %vm951_vm14, 0, %v2099_v0  ;;  %v2252_v30 = vsel %vm313_vm15, 0, %v2099_v0  ;;  %v1258_v62 = vsel %vm1133_vm2, %v1234_v54, 0.0  ;;  %vm154_vm14 = vcmp.ne.s32.totalorder %v2140_v13, 0 }
  0xae   :  { %3062 = vst [vmem:[#allocation6_spill] sm:$0xff] %v2249_v29  ;;  %v1126_v33 = vmul.f32 %v2249_v29, %v2249_v29  ;;  %v1343_v37 = vmul.f32 %v2164_v26, %v2252_v30 }
  0xaf   :  { %v326_v23 = vpop.permute.xlu0 %325  ;;  %v964_v31 = vpop.permute.xlu1 %963 }
  0xb0   :  { %vm329_vm0 = vcmp.ne.s32.totalorder %v326_v23, 0  ;;  %vm967_vm3 = vcmp.ne.s32.totalorder %v964_v31, 0  ;;  %v1161_v40 = vsel %vm1133_vm2, %v1126_v33, 0.0  ;;  %v1361_v9 = vsel %vm1133_vm2, %v1343_v37, 0.0 }
  0xb1   :  { %1359 = vadd.xlane.f32.xlu1 %v1358_v24  ;;  %1250 = vadd.xlane.f32.xlu0 %v1249_v25  ;;  %v2262_v38 = vsel %vm329_vm0, 0, %v2099_v0  ;;  %v2275_v47 = vsel %vm967_vm3, 0, %v2099_v0  ;;  %v1235_v24 = vmul.f32 %v2187_v41, %v2304_v6  ;;  %vm170_vm0 = vcmp.ne.s32.totalorder %v2146_v16, 0 }
  0xb2   :  { %v1344_v45 = vmul.f32 %v2179_v35, %v2262_v38  ;;  %3063 = vst [vmem:[#allocation7_spill] sm:$0xff] %v2275_v47  ;;  %v1127_v48 = vmul.f32 %v2275_v47, %v2275_v47  ;;  %v2356_v16 = vsel %vm170_vm0, 0, %v2099_v0 }
  0xb3   :  { %v342_v39 = vpop.permute.xlu0 %341  ;;  %v980_v44 = vpop.permute.xlu1 %979  ;;  %v1261_v33 = vsel %vm1133_vm2, %v1235_v24, 0.0  ;;  %3068 = vst [vmem:[#allocation12_spill] sm:$0xff] %v2356_v16 }
  0xb4   :  { %vm983_vm5 = vcmp.ne.s32.totalorder %v980_v44, 0  ;;  %vm345_vm6 = vcmp.ne.s32.totalorder %v342_v39, 0  ;;  %v1364_v52 = vsel %vm1133_vm2, %v1344_v45, 0.0  ;;  %v1164_v59 = vsel %vm1133_vm2, %v1127_v48, 0.0 }
  0xb5   :  { %1253 = vadd.xlane.f32.xlu1 %v1252_v36  ;;  %1159 = vadd.xlane.f32.xlu0 %v1158_v32  ;;  %v2287_v55 = vsel %vm983_vm5, 0, %v2099_v0  ;;  %v2290_v57 = vsel %vm345_vm6, 0, %v2099_v0  ;;  %v1236_v36 = vmul.f32 %v2206_v51, %v2318_v14  ;;  %vm202_vm6 = vcmp.ne.s32.totalorder %v2150_v18, 0 }
  0xb6   :  { %3064 = vst [vmem:[#allocation8_spill] sm:$0xff] %v2287_v55  ;;  %v1128_v60 = vmul.f32 %v2287_v55, %v2287_v55  ;;  %v1345_v1 = vmul.f32 %v2176_v34, %v2290_v57 }
  0xb7   :  { %v358_v49 = vpop.permute.xlu0 %357  ;;  %v996_v58 = vpop.permute.xlu1 %995  ;;  %v1264_v45 = vsel %vm1133_vm2, %v1236_v36, 0.0  ;;  %v2377_v36 = vsel %vm186_vm4, 0, %v2099_v0 }
  0xb8   :  { %vm361_vm7 = vcmp.ne.s32.totalorder %v358_v49, 0  ;;  %vm999_vm9 = vcmp.ne.s32.totalorder %v996_v58, 0  ;;  %v1167_v5 = vsel %vm1133_vm2, %v1128_v60, 0.0  ;;  %v1367_v11 = vsel %vm1133_vm2, %v1345_v1, 0.0  ;;  %3071 = vst [vmem:[#allocation15_spill] sm:$0xff] %v2377_v36 }
  0xb9   :  { %1162 = vadd.xlane.f32.xlu1 %v1161_v40  ;;  %1362 = vadd.xlane.f32.xlu0 %v1361_v9  ;;  %v2300_v2 = vsel %vm361_vm7, 0, %v2099_v0  ;;  %v2313_v25 = vsel %vm999_vm9, 0, %v2099_v0 }
  0xba   :  { %v1346_v23 = vmul.f32 %v2190_v42, %v2300_v2  ;;  %3065 = vst [vmem:[#allocation9_spill] sm:$0xff] %v2313_v25  ;;  %v1129_v28 = vmul.f32 %v2313_v25, %v2313_v25 }
  0xbb   :  { %v374_v3 = vpop.permute.xlu0 %373  ;;  %v1012_v10 = vpop.permute.xlu1 %1011 }
  0xbc   :  { %vm1015_vm11 = vcmp.ne.s32.totalorder %v1012_v10, 0  ;;  %vm377_vm12 = vcmp.ne.s32.totalorder %v374_v3, 0  ;;  %v1370_v32 = vsel %vm1133_vm2, %v1346_v23, 0.0  ;;  %v1170_v44 = vsel %vm1133_vm2, %v1129_v28, 0.0 }
  0xbd   :  { %1365 = vadd.xlane.f32.xlu1 %v1364_v52  ;;  %1256 = vadd.xlane.f32.xlu0 %v1255_v53  ;;  %v2325_v37 = vsel %vm1015_vm11, 0, %v2099_v0  ;;  %v2328_v39 = vsel %vm377_vm12, 0, %v2099_v0  ;;  %v2342_v52 = vsel %vm154_vm14, 0, %v2099_v0  ;;  %vm250_vm12 = vcmp.ne.s32.totalorder %v2152_v19, 0 }
  0xbe   :  { %3066 = vst [vmem:[#allocation10_spill] sm:$0xff] %v2325_v37  ;;  %v1130_v9 = vmul.f32 %v2325_v37, %v2325_v37  ;;  %v1347_v46 = vmul.f32 %v2187_v41, %v2328_v39  ;;  %vm266_vm14 = vcmp.ne.s32.totalorder %v2158_v22, 0 }
  0xbf   :  { %v390_v31 = vpop.permute.xlu0 %389  ;;  %v1028_v40 = vpop.permute.xlu1 %1027 }
  0xc0   :  { %vm393_vm13 = vcmp.ne.s32.totalorder %v390_v31, 0  ;;  %vm1031_vm15 = vcmp.ne.s32.totalorder %v1028_v40, 0  ;;  %v1173_v49 = vsel %vm1133_vm2, %v1130_v9, 0.0  ;;  %v1373_v13 = vsel %vm1133_vm2, %v1347_v46, 0.0 }
  0xc1   :  { %1259 = vadd.xlane.f32.xlu1 %v1258_v62  ;;  %1165 = vadd.xlane.f32.xlu0 %v1164_v59  ;;  %v2338_v48 = vsel %vm393_vm13, 0, %v2099_v0  ;;  %v1237_v59 = vmul.f32 %v2203_v50, %v2342_v52  ;;  %v2351_v60 = vsel %vm1031_vm15, 0, %v2099_v0 }
  0xc2   :  { %v1348_v58 = vmul.f32 %v2206_v51, %v2338_v48  ;;  %3067 = vst [vmem:[#allocation11_spill] sm:$0xff] %v2351_v60  ;;  %v1131_v62 = vmul.f32 %v2351_v60, %v2351_v60 }
  0xc3   :  { %v1044_v53 = vpop.permute.xlu1 %1043  ;;  %v406_v54 = vpop.permute.xlu0 %405  ;;  %v1267_v3 = vsel %vm1133_vm2, %v1237_v59, 0.0 }
  0xc4   :  { %vm1047_vm1 = vcmp.ne.s32.totalorder %v1044_v53, 0  ;;  %vm409_vm3 = vcmp.ne.s32.totalorder %v406_v54, 0  ;;  %v1376_v1 = vsel %vm1133_vm2, %v1348_v58, 0.0  ;;  %v1176_v23 = vsel %vm1133_vm2, %v1131_v62, 0.0 }
  0xc5   :  { %1168 = vadd.xlane.f32.xlu1 %v1167_v5  ;;  %1368 = vadd.xlane.f32.xlu0 %v1367_v11  ;;  %v1238_v5 = vmul.f32 %v2237_v8, %v2356_v16  ;;  %v2363_v10 = vsel %vm1047_vm1, 0, %v2099_v0  ;;  %v2366_v11 = vsel %vm409_vm3, 0, %v2099_v0  ;;  %v2405_v62 = vsel %vm218_vm8, 0, %v2099_v0 }
  0xc6   :  { %3069 = vst [vmem:[#allocation13_spill] sm:$0xff] %v2363_v10  ;;  %3070 = vst [vmem:[#allocation14_spill] sm:$0xff] %v2366_v11  ;;  %v1132_v24 = vmul.f32 %v2363_v10, %v2363_v10  ;;  %vm282_vm1 = vcmp.ne.s32.totalorder %v2156_v21, 0 }
  0xc7   :  { %v422_v28 = vpop.permute.xlu0 %421  ;;  %v1270_v31 = vsel %vm1133_vm2, %v1238_v5, 0.0  ;;  %v438_v53 = vpop.permute.xlu1 %437  ;;  %3075 = vst [vmem:[#allocation19_spill] sm:$0xff] %v2405_v62 }
  0xc8   :  { %vm425_vm5 = vcmp.ne.s32.totalorder %v422_v28, 0  ;;  %vm441_vm7 = vcmp.ne.s32.totalorder %v438_v53, 0  ;;  %v2421_v28 = vsel %vm234_vm10, 0, %v2099_v0 }
  0xc9   :  { %1371 = vadd.xlane.f32.xlu1 %v1370_v32  ;;  %1262 = vadd.xlane.f32.xlu0 %v1261_v33  ;;  %v1349_v32 = vmul.f32 %v2203_v50, %v2366_v11  ;;  %v1179_v33 = vsel %vm1133_vm2, %v1132_v24, 0.0  ;;  %v2383_v15 = vsel %vm425_vm5, 0, %v2099_v0  ;;  %v2399_v58 = vsel %vm441_vm7, 0, %v2099_v0  ;;  %3077 = vst [vmem:[#allocation21_spill] sm:$0xff] %v2421_v28 }
  0xca   :  { %3072 = vst [vmem:[#allocation16_spill] sm:$0xff] %v2383_v15  ;;  %3074 = vst [vmem:[#allocation18_spill] sm:$0xff] %v2399_v58  ;;  %v1351_v18 = vmul.f32 %v2249_v29, %v2399_v58 }
  0xcb   :  { %v1379_v40 = vsel %vm1133_vm2, %v1349_v32, 0.0  ;;  %v454_v59 = vpop.permute.xlu0 %453 }
  0xcc   :  { %vm457_vm9 = vcmp.ne.s32.totalorder %v454_v59, 0 }
  0xcd   :  { %1265 = vadd.xlane.f32.xlu1 %v1264_v45  ;;  %1171 = vadd.xlane.f32.xlu0 %v1170_v44  ;;  %v1239_v44 = vmul.f32 %v2249_v29, %v2377_v36  ;;  %v1350_v45 = vmul.f32 %v2237_v8, %v2383_v15  ;;  %v2411_v5 = vsel %vm457_vm9, 0, %v2099_v0 }
  0xce   :  { %3076 = vst [vmem:[#allocation20_spill] sm:$0xff] %v2411_v5  ;;  %v1352_v17 = vmul.f32 %v2275_v47, %v2411_v5 }
  0xcf   :  { %v1273_v9 = vsel %vm1133_vm2, %v1239_v44, 0.0  ;;  %v1382_v46 = vsel %vm1133_vm2, %v1350_v45, 0.0 }
  0xd0   :  { %v1388_v24 = vsel %vm1133_vm2, %v1352_v17, 0.0 }
  0xd1   :  { %1174 = vadd.xlane.f32.xlu1 %v1173_v49  ;;  %1374 = vadd.xlane.f32.xlu0 %v1373_v13  ;;  %v2393_v49 = vsel %vm202_vm6, 0, %v2099_v0 }
  0xd2   :  { %3073 = vst [vmem:[#allocation17_spill] sm:$0xff] %v2393_v49  ;;  %v1240_v54 = vmul.f32 %v2275_v47, %v2393_v49 }
  0xd4   :  { %v1276_v13 = vsel %vm1133_vm2, %v1240_v54, 0.0 }
  0xd5   :  { %1377 = vadd.xlane.f32.xlu1 %v1376_v1  ;;  %1268 = vadd.xlane.f32.xlu0 %v1267_v3  ;;  %v1385_v1 = vsel %vm1133_vm2, %v1351_v18, 0.0  ;;  %v1241_v3 = vmul.f32 %v2287_v55, %v2405_v62 }
  0xd9   :  { %1271 = vadd.xlane.f32.xlu1 %v1270_v31  ;;  %1177 = vadd.xlane.f32.xlu0 %v1176_v23  ;;  %v1279_v23 = vsel %vm1133_vm2, %v1241_v3, 0.0  ;;  %v1242_v31 = vmul.f32 %v2313_v25, %v2421_v28  ;;  %v2450_v3 = vsel %vm266_vm14, 0, %v2099_v0 }
  0xda   :  { %3081 = vst [vmem:[#allocation25_spill] sm:$0xff] %v2450_v3  ;;  %v1244_v17 = vmul.f32 %v2351_v60, %v2450_v3 }
  0xdb   :  { %v1282_v32 = vsel %vm1133_vm2, %v1242_v31, 0.0 }
  0xdc   :  { %v1288_v31 = vsel %vm1133_vm2, %v1244_v17, 0.0 }
  0xdd   :  { %1180 = vadd.xlane.f32.xlu1 %v1179_v33  ;;  %1380 = vadd.xlane.f32.xlu0 %v1379_v40  ;;  %v470_v33 = vpop.permute.xlu1 %469 }
  0xde   :  { %vm473_vm11 = vcmp.ne.s32.totalorder %v470_v33, 0 }
  0xdf   :  { %v2427_v44 = vsel %vm473_vm11, 0, %v2099_v0 }
  0xe0   :  { %3078 = vst [vmem:[#allocation22_spill] sm:$0xff] %v2427_v44  ;;  %v1353_v20 = vmul.f32 %v2287_v55, %v2427_v44 }
  0xe1   :  { %1274 = vadd.xlane.f32.xlu1 %v1273_v9  ;;  %v502_v40 = vpop.permute.xlu1 %501  ;;  %v486_v9 = vpop.permute.xlu0 %485 }
  0xe2   :  { %vm489_vm13 = vcmp.ne.s32.totalorder %v486_v9, 0  ;;  %v1391_v54 = vsel %vm1133_vm2, %v1353_v20, 0.0  ;;  %vm505_vm15 = vcmp.ne.s32.totalorder %v502_v40, 0 }
  0xe3   :  { %v2441_v59 = vsel %vm489_vm13, 0, %v2099_v0 }
  0xe4   :  { %3080 = vst [vmem:[#allocation24_spill] sm:$0xff] %v2441_v59  ;;  %v1354_v19 = vmul.f32 %v2313_v25, %v2441_v59 }
  0xe5   :  { %1383 = vadd.xlane.f32.xlu1 %v1382_v46  ;;  %v534_v45 = vpop.permute.xlu1 %533  ;;  %v2433_v46 = vsel %vm250_vm12, 0, %v2099_v0 }
  0xe6   :  { %3079 = vst [vmem:[#allocation23_spill] sm:$0xff] %v2433_v46  ;;  %vm537_vm3 = vcmp.ne.s32.totalorder %v534_v45, 0 }
  0xf3   :  { %549 = vbcast.lane.b32.xlu0 %v2107_v4, 256 }
  0xf6   :  { %564 = vbcast.lane.b32.xlu1 %v2107_v4, 264 }
 0x112   :  { %1277 = vadd.xlane.f32.xlu0 %v1276_v13  ;;  %v1243_v13 = vmul.f32 %v2325_v37, %v2433_v46 }
 0x114   :  { %v1285_v18 = vsel %vm1133_vm2, %v1243_v13, 0.0 }
 0x11a   :  { %1386 = vadd.xlane.f32.xlu1 %v1385_v1 }
 0x11e   :  { %1280 = vadd.xlane.f32.xlu1 %v1279_v23  ;;  %v1394_v23 = vsel %vm1133_vm2, %v1354_v19, 0.0 }
 0x122   :  { %1389 = vadd.xlane.f32.xlu1 %v1388_v24  ;;  %v518_v24 = vpop.permute.xlu0 %517 }
 0x123   :  { %vm521_vm0 = vcmp.ne.s32.totalorder %v518_v24, 0 }
 0x124   :  { %v2481_v3 = vsel %vm521_vm0, 0, %v2099_v0 }
 0x125   :  { %3083 = vst [vmem:[#allocation27_spill] sm:$0xff] %v2481_v3  ;;  %v1356_v40 = vmul.f32 %v2351_v60, %v2481_v3  ;;  %v2501_v3 = vsel %vm282_vm1, 0, %v2099_v0  ;;  %v2511_v60 = vsel %vm537_vm3, 0, %v2099_v0 }
 0x126   :  { %3084 = vst [vmem:[#allocation28_spill] sm:$0xff] %v2501_v3  ;;  %3085 = vst [vmem:[#allocation29_spill] sm:$0xff] %v2511_v60  ;;  %v1357_v21 = vmul.f32 %v2363_v10, %v2511_v60 }
 0x127   :  { %v1400_v24 = vsel %vm1133_vm2, %v1356_v40, 0.0  ;;  %v1245_v40 = vmul.f32 %v2363_v10, %v2501_v3 }
 0x128   :  { %580 = vbcast.lane.b32.xlu0 %v2107_v4, 272  ;;  %v1403_v3 = vsel %vm1133_vm2, %v1357_v21, 0.0 }
 0x12a   :  { %v2435_v53 = vpop.xlane.xlu1 %1138 }
 0x12b   :  { %v1183_v47 = vmax.f32 %v2435_v53, 1e-24 }
 0x132   :  { %v2447_v1 = vpop.xlane.xlu1 %1147 }
 0x133   :  { %596 = vbcast.lane.b32.xlu1 %v2107_v4, 280 }
 0x136   :  { %v2456_v22 = vpop.xlane.xlu1 %1153 }
 0x13a   :  { %v2460_v33 = vpop.xlane.xlu1 %1156 }
 0x13e   :  { %v2464_v20 = vpop.xlane.xlu1 %1359 }
 0x142   :  { %v2468_v13 = vpop.xlane.xlu1 %1253 }
 0x147   :  { %1283 = vadd.xlane.f32.xlu0 %v1282_v32  ;;  %v1136_v32 = vpop.xlane.xlu0 %1135 }
 0x14b   :  { %v2462_v9 = vpop.xlane.xlu0 %1141 }
 0x157   :  { %1392 = vadd.xlane.f32.xlu1 %v1391_v54  ;;  %v2466_v54 = vpop.xlane.xlu0 %1144 }
 0x158   :  { %v1185_v11 = vmax.f32 %v2466_v54, 1e-24 }
 0x15b   :  { %1286 = vadd.xlane.f32.xlu1 %v1285_v18  ;;  %v2471_v19 = vpop.xlane.xlu0 %1150  ;;  %v2474_v18 = vsel %vm505_vm15, 0, %v2099_v0 }
 0x15c   :  { %3082 = vst [vmem:[#allocation26_spill] sm:$0xff] %v2474_v18 }
 0x15d   :  { %612 = vbcast.lane.b32.xlu0 %v2107_v4, 288 }
 0x15f   :  { %1395 = vadd.xlane.f32.xlu1 %v1394_v23  ;;  %v2476_v23 = vpop.xlane.xlu1 %1162  ;;  %v1248_v17 = vpop.xlane.xlu0 %1247 }
 0x161   :  { %628 = vbcast.lane.b32.xlu0 %v2107_v4, 296 }
 0x163   :  { %1289 = vadd.xlane.f32.xlu1 %v1288_v31  ;;  %v1355_v31 = vmul.f32 %v2325_v37, %v2474_v18  ;;  %v2483_v44 = vpop.xlane.xlu1 %1365  ;;  %v1251_v28 = vpop.xlane.xlu0 %1250  ;;  %v1291_v37 = vsel %vm1133_vm2, %v1245_v40, 0.0 }
 0x167   :  { %v2489_v59 = vpop.xlane.xlu1 %1259  ;;  %v2491_v25 = vpop.xlane.xlu0 %1159 }
 0x16b   :  { %v2493_v18 = vpop.xlane.xlu1 %1168  ;;  %v2495_v46 = vpop.xlane.xlu0 %1362 }
 0x174   :  { %644 = vbcast.lane.b32.xlu1 %v2107_v4, 304  ;;  %v1397_v4 = vsel %vm1133_vm2, %v1355_v31, 0.0  ;;  %v2498_v31 = vpop.xlane.xlu1 %1371 }
 0x178   :  { %v2515_v45 = vpop.xlane.xlu1 %1265 }
 0x17c   :  { %v2521_v5 = vpop.xlane.xlu1 %1174 }
 0x17d   :  { %3086 = vst [vmem:[#allocation30_spill] sm:$0xff] %v2521_v5 }
 0x180   :  { %1398 = vadd.xlane.f32.xlu0 %v1397_v4  ;;  %v2503_v4 = vpop.xlane.xlu0 %1256 }
 0x184   :  { %1401 = vadd.xlane.f32.xlu0 %v1400_v24  ;;  %v654_v24 = vld [vmem:[%s3022_s5] ss:$0 sm:$0xff]  ;;  %v2518_v49 = vpop.xlane.xlu0 %1165 }
 0x185   :  { %v657_v58 = vand.u32 255, %v654_v24  ;;  %v2525_v24 = vpop.xlane.xlu1 %1377 }
 0x188   :  { %v2523_v62 = vpop.xlane.xlu0 %1368 }
 0x189   :  { %v2529_v10 = vpop.xlane.xlu1 %1271 }
 0x18c   :  { %v2527_v60 = vpop.xlane.xlu0 %1262 }
 0x18d   :  { %v2533_v40 = vpop.xlane.xlu1 %1180 }
 0x18e   :  { %3088 = vst [vmem:[#allocation32_spill] sm:$0xff] %v2533_v40 }
 0x191   :  { %v2538_v55 = vpop.xlane.xlu1 %1274 }
 0x195   :  { %v2542_v5 = vpop.xlane.xlu1 %1383 }
 0x196   :  { %3089 = vst [vmem:[#allocation33_spill] sm:$0xff] %v2542_v5 }
 0x198   :  { %1292 = vadd.xlane.f32.xlu1 %v1291_v37  ;;  %v2531_v37 = vpop.xlane.xlu0 %1171 }
 0x199   :  { %3087 = vst [vmem:[#allocation31_spill] sm:$0xff] %v2531_v37  ;;  %v1184_v37 = vmax.f32 %v2462_v9, 1e-24 }
 0x19a   :  { %660 = vbcast.lane.b32.xlu0 %v657_v58, 312 }
 0x19c   :  { %1404 = vadd.xlane.f32.xlu1 %v1403_v3  ;;  %v1182_v3 = vmax.f32 %v1136_v32, 1e-24  ;;  %v2535_v21 = vpop.xlane.xlu0 %1374 }
 0x19e   :  { %676 = vbcast.lane.b32.xlu0 %v657_v58, 320  ;;  %1923 = vrcp.f32 %v1182_v3 }
 0x19f   :  { %1925 = vrcp.f32 %v1183_v47 }
 0x1a0   :  { %v2540_v15 = vpop.xlane.xlu0 %1268  ;;  %1927 = vrcp.f32 %v1184_v37  ;;  %v1186_v37 = vmax.f32 %v2447_v1, 1e-24 }
 0x1a1   :  { %1929 = vrcp.f32 %v1185_v11 }
 0x1a2   :  { %708 = vbcast.lane.b32.xlu0 %v657_v58, 336  ;;  %1931 = vrcp.f32 %v1186_v37 }
 0x1a4   :  { %v2545_v36 = vpop.xlane.xlu0 %1177 }
 0x1a5   :  { %3090 = vst [vmem:[#allocation34_spill] sm:$0xff] %v2545_v36 }
 0x1a6   :  { %724 = vbcast.lane.b32.xlu0 %v657_v58, 344 }
 0x1a8   :  { %v1924_v40 = vpop.eup %1923  ;;  %v2548_v3 = vpop.xlane.xlu0 %1380 }
 0x1a9   :  { %v1294_v32 = vmul.f32 %v1924_v40, %v1248_v17  ;;  %v1926_v16 = vpop.eup %1925  ;;  %v1406_v5 = vmul.f32 %v1924_v40, %v2464_v20 }
 0x1aa   :  { %740 = vbcast.lane.b32.xlu0 %v657_v58, 352  ;;  %v1295_v53 = vmul.f32 %v1926_v16, %v1251_v28  ;;  %v1928_v54 = vpop.eup %1927  ;;  %v543_v28 = vld [vmem:[%s3018_s1] sm:$0xff] }
 0x1ab   :  { %v1310_v29 = vmul.f32 %v1294_v32, %v2167_v27  ;;  %v1422_v11 = vmul.f32 %v1406_v5, %v2167_v27  ;;  %v1296_v32 = vmul.f32 %v1928_v54, %v2468_v13  ;;  %v1930_v27 = vpop.eup %1929 }
 0x1ac   :  { %v1311_v9 = vmul.f32 %v1295_v53, %v2164_v26  ;;  %v550_v36 = vpop.permute.xlu0 %549  ;;  %v1407_v53 = vmul.f32 %v1926_v16, %v2495_v46 }
 0x1ad   :  { %692 = vbcast.lane.b32.xlu1 %v657_v58, 328  ;;  %v2557_v17 = vsub.f32 %v2217_v56, %v1310_v29  ;;  %vm553_vm4 = vcmp.ne.s32.totalorder %v550_v36, 0  ;;  %v1187_v29 = vmax.f32 %v2471_v19, 1e-24  ;;  %v1312_v36 = vmul.f32 %v1296_v32, %v2179_v35 }
 0x1ae   :  { %756 = vbcast.lane.b32.xlu0 %v657_v58, 360  ;;  %v2569_v40 = vsub.f32 %v2228_v63, %v1311_v9  ;;  %v2575_v1 = vsel %vm553_vm4, %v543_v28, %v2099_v0  ;;  %v2581_v63 = vsub.f32 %v2224_v61, %v1422_v11  ;;  %v1297_v9 = vmul.f32 %v1930_v27, %v2503_v4 }
 0x1af   :  { %v1454_v56 = vmul.f32 %v2557_v17, %v2557_v17  ;;  %v1566_v19 = vmul.f32 %v2575_v1, %v2575_v1  ;;  %1933 = vrcp.f32 %v1187_v29  ;;  %v1408_v61 = vmul.f32 %v1928_v54, %v2483_v44  ;;  %v1932_v54 = vpop.eup %1931 }
 0x1b0   :  { %v1455_v13 = vmul.f32 %v2569_v40, %v2569_v40  ;;  %v1678_v16 = vmul.f32 %v2581_v63, %v2581_v63  ;;  %v2598_v46 = vsub.f32 %v2242_v7, %v1312_v36  ;;  %v1423_v4 = vmul.f32 %v1407_v53, %v2164_v26 }
 0x1b1   :  { %788 = vbcast.lane.b32.xlu1 %v657_v58, 376  ;;  %v1470_v37 = vsel %vm1133_vm2, %v1454_v56, 0.0  ;;  %v1313_v32 = vmul.f32 %v1297_v9, %v2176_v34  ;;  %v1582_v29 = vsel %vm1133_vm2, %v1566_v19, 0.0  ;;  %v1424_v7 = vmul.f32 %v1408_v61, %v2179_v35 }
 0x1b2   :  { %772 = vbcast.lane.b32.xlu0 %v657_v58, 368  ;;  %v565_v58 = vpop.permute.xlu1 %564  ;;  %v1473_v11 = vsel %vm1133_vm2, %v1455_v13, 0.0  ;;  %v1298_v36 = vmul.f32 %v1932_v54, %v2489_v59  ;;  %v1694_v53 = vsel %vm1133_vm2, %v1678_v16, 0.0  ;;  %v1456_v9 = vmul.f32 %v2598_v46, %v2598_v46 }
 0x1b3   :  { %vm568_vm5 = vcmp.ne.s32.totalorder %v565_v58, 0  ;;  %v2623_v35 = vsub.f32 %v2266_v43, %v1313_v32 }
 0x1b4   :  { %v2589_v58 = vsel %vm568_vm5, 0, %v2099_v0  ;;  %v1314_v61 = vmul.f32 %v1298_v36, %v2190_v42 }
 0x1b5   :  { %v1567_v56 = vmul.f32 %v2589_v58, %v2589_v58  ;;  %v1457_v32 = vmul.f32 %v2623_v35, %v2623_v35 }
 0x1b6   :  { %v2551_v47 = vpop.xlane.xlu1 %1386 }
 0x1b7   :  { %3091 = vst [vmem:[#allocation35_spill] sm:$0xff] %v2551_v47  ;;  %v2564_v47 = vpop.xlane.xlu0 %1277  ;;  %v1585_v19 = vsel %vm1133_vm2, %v1567_v56, 0.0  ;;  %v2629_v56 = vsub.f32 %v2262_v38, %v1424_v7  ;;  %v2646_v7 = vsub.f32 %v2280_v12, %v1314_v61 }
 0x1b9   :  { %v1934_v59 = vpop.eup %1933 }
 0x1ba   :  { %v2566_v20 = vpop.xlane.xlu1 %1280 }
 0x1bb   :  { %v581_v5 = vpop.permute.xlu0 %580 }
 0x1bc   :  { %vm584_vm6 = vcmp.ne.s32.totalorder %v581_v5, 0  ;;  %v1188_v5 = vmax.f32 %v2456_v22, 1e-24 }
 0x1bd   :  { %v2607_v44 = vsel %vm584_vm6, 0, %v2099_v0 }
 0x1be   :  { %v2591_v28 = vpop.xlane.xlu1 %1389  ;;  %v1568_v22 = vmul.f32 %v2607_v44, %v2607_v44  ;;  %1935 = vrcp.f32 %v1188_v5 }
 0x1c0   :  { %v1588_v43 = vsel %vm1133_vm2, %v1568_v22, 0.0  ;;  %v1458_v22 = vmul.f32 %v2646_v7, %v2646_v7 }
 0x1c2   :  { %v597_v26 = vpop.permute.xlu1 %596 }
 0x1c3   :  { %vm600_vm7 = vcmp.ne.s32.totalorder %v597_v26, 0 }
 0x1c4   :  { %v2638_v5 = vsel %vm600_vm7, 0, %v2099_v0 }
 0x1c5   :  { %v1569_v26 = vmul.f32 %v2638_v5, %v2638_v5 }
 0x1d1   :  { %1471 = vadd.xlane.f32.xlu0 %v1470_v37  ;;  %v2620_v37 = vsub.f32 %v2252_v30, %v1423_v4  ;;  %v1299_v30 = vmul.f32 %v1934_v59, %v2527_v60  ;;  %v1410_v60 = vmul.f32 %v1932_v54, %v2498_v31 }
 0x1d3   :  { %v1679_v4 = vmul.f32 %v2620_v37, %v2620_v37  ;;  %v1315_v36 = vmul.f32 %v1299_v30, %v2187_v41  ;;  %v1426_v31 = vmul.f32 %v1410_v60, %v2190_v42  ;;  %v1482_v30 = vsel %vm1133_vm2, %v1458_v22, 0.0 }
 0x1d4   :  { %v2611_v13 = vpop.xlane.xlu0 %1283 }
 0x1d5   :  { %1474 = vadd.xlane.f32.xlu0 %v1473_v11  ;;  %1583 = vadd.xlane.f32.xlu1 %v1582_v29  ;;  %v1409_v11 = vmul.f32 %v1930_v27, %v2523_v62  ;;  %v1476_v29 = vsel %vm1133_vm2, %v1456_v9, 0.0  ;;  %v1189_v62 = vmax.f32 %v2460_v33, 1e-24  ;;  %v1680_v27 = vmul.f32 %v2629_v56, %v2629_v56 }
 0x1d6   :  { %v1479_v33 = vsel %vm1133_vm2, %v1457_v32, 0.0  ;;  %v2670_v42 = vsub.f32 %v2304_v6, %v1315_v36 }
 0x1d7   :  { %v1425_v38 = vmul.f32 %v1409_v11, %v2176_v34  ;;  %1937 = vrcp.f32 %v1189_v62  ;;  %v1936_v34 = vpop.eup %1935  ;;  %v1700_v54 = vsel %vm1133_vm2, %v1680_v27, 0.0 }
 0x1d8   :  { %v613_v16 = vpop.permute.xlu0 %612  ;;  %v1300_v61 = vmul.f32 %v1936_v34, %v2515_v45  ;;  %v2676_v45 = vsub.f32 %v2300_v2, %v1426_v31  ;;  %v1459_v62 = vmul.f32 %v2670_v42, %v2670_v42 }
 0x1d9   :  { %1586 = vadd.xlane.f32.xlu0 %v1585_v19  ;;  %1695 = vadd.xlane.f32.xlu1 %v1694_v53  ;;  %vm616_vm8 = vcmp.ne.s32.totalorder %v613_v16, 0  ;;  %v1697_v53 = vsel %vm1133_vm2, %v1679_v4, 0.0  ;;  %v2661_v19 = vsub.f32 %v2290_v57, %v1425_v38  ;;  %v1411_v4 = vmul.f32 %v1934_v59, %v2535_v21 }
 0x1da   :  { %v2654_v9 = vsel %vm616_vm8, 0, %v2099_v0  ;;  %v1682_v2 = vmul.f32 %v2676_v45, %v2676_v45 }
 0x1db   :  { %v1570_v11 = vmul.f32 %v2654_v9, %v2654_v9  ;;  %v1681_v57 = vmul.f32 %v2661_v19, %v2661_v19  ;;  %v1427_v21 = vmul.f32 %v1411_v4, %v2187_v41 }
 0x1dc   :  { %v629_v12 = vpop.permute.xlu0 %628 }
 0x1dd   :  { %1477 = vadd.xlane.f32.xlu0 %v1476_v29  ;;  %1589 = vadd.xlane.f32.xlu1 %v1588_v43  ;;  %v1591_v29 = vsel %vm1133_vm2, %v1569_v26, 0.0  ;;  %vm632_vm9 = vcmp.ne.s32.totalorder %v629_v12, 0  ;;  %v1316_v43 = vmul.f32 %v1300_v61, %v2206_v51  ;;  %v1594_v6 = vsel %vm1133_vm2, %v1570_v11, 0.0 }
 0x1de   :  { %v2686_v38 = vsel %vm632_vm9, 0, %v2099_v0  ;;  %v1703_v60 = vsel %vm1133_vm2, %v1681_v57, 0.0  ;;  %v1485_v26 = vsel %vm1133_vm2, %v1459_v62, 0.0  ;;  %v1706_v12 = vsel %vm1133_vm2, %v1682_v2, 0.0 }
 0x1df   :  { %v1571_v59 = vmul.f32 %v2686_v38, %v2686_v38  ;;  %v2708_v22 = vsub.f32 %v2328_v39, %v1427_v21  ;;  %v1412_v61 = vmul.f32 %v1936_v34, %v2525_v24  ;;  %v1190_v62 = vmax.f32 %v2491_v25, 1e-24 }
 0x1e0   :  { %v1191_v2 = vmax.f32 %v2476_v23, 1e-24  ;;  %v1192_v23 = vmax.f32 %v2518_v49, 1e-24  ;;  %v3095_v49 = vld [vmem:[#allocation14_spill] sm:$0xff] }
 0x1e1   :  { %1698 = vadd.xlane.f32.xlu0 %v1697_v53  ;;  %1480 = vadd.xlane.f32.xlu1 %v1479_v33  ;;  %v1938_v27 = vpop.eup %1937  ;;  %v2698_v53 = vsub.f32 %v2318_v14, %v1316_v43  ;;  %v1597_v41 = vsel %vm1133_vm2, %v1571_v59, 0.0  ;;  %1939 = vrcp.f32 %v1190_v62 }
 0x1e2   :  { %v1301_v33 = vmul.f32 %v1938_v27, %v2540_v15  ;;  %1941 = vrcp.f32 %v1191_v2  ;;  %v1413_v25 = vmul.f32 %v1938_v27, %v2548_v3 }
 0x1e4   :  { %v2666_v16 = vpop.xlane.xlu1 %1392  ;;  %v1317_v14 = vmul.f32 %v1301_v33, %v2203_v50 }
 0x1e5   :  { %1592 = vadd.xlane.f32.xlu0 %v1591_v29  ;;  %1701 = vadd.xlane.f32.xlu1 %v1700_v54  ;;  %v1460_v54 = vmul.f32 %v2698_v53, %v2698_v53  ;;  %v1683_v29 = vmul.f32 %v2708_v22, %v2708_v22 }
 0x1e6   :  { %v2717_v57 = vsub.f32 %v2342_v52, %v1317_v14 }
 0x1e7   :  { %v1488_v11 = vsel %vm1133_vm2, %v1460_v54, 0.0  ;;  %v1709_v34 = vsel %vm1133_vm2, %v1683_v29, 0.0  ;;  %v3094_v29 = vld [vmem:[#allocation33_spill] sm:$0xff] }
 0x1e8   :  { %v2680_v32 = vpop.xlane.xlu1 %1286  ;;  %v1461_v4 = vmul.f32 %v2717_v57, %v2717_v57 }
 0x1e9   :  { %1483 = vadd.xlane.f32.xlu0 %v1482_v30  ;;  %1595 = vadd.xlane.f32.xlu1 %v1594_v6  ;;  %v1428_v30 = vmul.f32 %v1412_v61, %v2206_v51  ;;  %v3092_v61 = vld [vmem:[#allocation6_spill] sm:$0xff] }
 0x1ea   :  { %v1491_v52 = vsel %vm1133_vm2, %v1461_v4, 0.0 }
 0x1eb   :  { %v2729_v51 = vsub.f32 %v2338_v48, %v1428_v30  ;;  %v1940_v21 = vpop.eup %1939 }
 0x1ec   :  { %v2694_v36 = vpop.xlane.xlu1 %1395  ;;  %v1302_v48 = vmul.f32 %v1940_v21, %v2529_v10  ;;  %v2741_v33 = vpop.eup %1941  ;;  %v1429_v10 = vmul.f32 %v1413_v25, %v2203_v50  ;;  %v1414_v30 = vmul.f32 %v1940_v21, %v3094_v29  ;;  %v3096_v50 = vld [vmem:[#allocation15_spill] sm:$0xff]  ;;  %v3099_v25 = vld [vmem:[#allocation16_spill] sm:$0xff] }
 0x1ed   :  { %1704 = vadd.xlane.f32.xlu0 %v1703_v60  ;;  %1486 = vadd.xlane.f32.xlu1 %v1485_v26  ;;  %v1684_v6 = vmul.f32 %v2729_v51, %v2729_v51  ;;  %v1193_v26 = vmax.f32 %v2493_v18, 1e-24  ;;  %v3093_v18 = vld [vmem:[#allocation12_spill] sm:$0xff] }
 0x1ee   :  { %v2762_v27 = vsub.f32 %v3095_v49, %v1429_v10  ;;  %v1430_v4 = vmul.f32 %v1414_v30, %v2237_v8  ;;  %v3101_v49 = vld [vmem:[#allocation8_spill] sm:$0xff] }
 0x1ef   :  { %v1712_v60 = vsel %vm1133_vm2, %v1684_v6, 0.0  ;;  %1943 = vrcp.f32 %v1193_v26  ;;  %v3098_v6 = vld [vmem:[#allocation30_spill] sm:$0xff] }
 0x1f0   :  { %v2701_v31 = vpop.xlane.xlu1 %1289  ;;  %1945 = vrcp.f32 %v1192_v23  ;;  %v1195_v62 = vmax.f32 %v3098_v6, 1e-24  ;;  %v1685_v26 = vmul.f32 %v2762_v27, %v2762_v27 }
 0x1f1   :  { %1707 = vadd.xlane.f32.xlu1 %v1706_v12  ;;  %1598 = vadd.xlane.f32.xlu0 %v1597_v41  ;;  %v1318_v12 = vmul.f32 %v1302_v48, %v2237_v8  ;;  %v1303_v41 = vmul.f32 %v2741_v33, %v2538_v55 }
 0x1f2   :  { %1947 = vrcp.f32 %v1195_v62 }
 0x1f3   :  { %v1319_v14 = vmul.f32 %v1303_v41, %v3092_v61  ;;  %v2785_v41 = vsub.f32 %v3099_v25, %v1430_v4 }
 0x1f4   :  { %v645_v15 = vpop.permute.xlu1 %644 }
 0x1f5   :  { %vm648_vm10 = vcmp.ne.s32.totalorder %v645_v15, 0  ;;  %1489 = vadd.xlane.f32.xlu0 %v1488_v11  ;;  %v2753_v11 = vsub.f32 %v3093_v18, %v1318_v12 }
 0x1f6   :  { %v2720_v39 = vsel %vm648_vm10, 0, %v2099_v0 }
 0x1f7   :  { %v1572_v24 = vmul.f32 %v2720_v39, %v2720_v39 }
 0x1f9   :  { %1710 = vadd.xlane.f32.xlu0 %v1709_v34  ;;  %v1600_v43 = vsel %vm1133_vm2, %v1572_v24, 0.0  ;;  %v2765_v24 = vsub.f32 %v3096_v50, %v1319_v14  ;;  %v2777_v21 = vpop.eup %1943  ;;  %v3100_v14 = vld [vmem:[#allocation31_spill] sm:$0xff] }
 0x1fa   :  { %1601 = vadd.xlane.f32.xlu1 %v1600_v43  ;;  %v1462_v43 = vmul.f32 %v2753_v11, %v2753_v11  ;;  %v1305_v23 = vmul.f32 %v2777_v21, %v2566_v20  ;;  %v1946_v18 = vpop.eup %1945 }
 0x1fb   :  { %3097 = vst [vmem:[#allocation6_spill] sm:$0xff] %v2765_v24  ;;  %v1463_v8 = vmul.f32 %v2765_v24, %v2765_v24  ;;  %v1416_v29 = vmul.f32 %v1946_v18, %v2591_v28  ;;  %v1304_v4 = vmul.f32 %v1946_v18, %v2564_v47  ;;  %v3107_v18 = vld [vmem:[#allocation20_spill] sm:$0xff] }
 0x1fc   :  { %v1494_v48 = vsel %vm1133_vm2, %v1462_v43, 0.0  ;;  %v1321_v50 = vmul.f32 %v1305_v23, %v3101_v49  ;;  %v1686_v43 = vmul.f32 %v2785_v41, %v2785_v41  ;;  %v2811_v47 = vpop.eup %1947 }
 0x1fd   :  { %v1497_v20 = vsel %vm1133_vm2, %v1463_v8, 0.0  ;;  %v3105_v8 = vld [vmem:[#allocation32_spill] sm:$0xff] }
 0x1fe   :  { %1492 = vadd.xlane.f32.xlu1 %v1491_v52 }
 0x202   :  { %1713 = vadd.xlane.f32.xlu1 %v1712_v60 }
 0x20d   :  { %v2738_v59 = vpop.xlane.xlu0 %1398 }
 0x211   :  { %v2747_v54 = vpop.xlane.xlu0 %1401 }
 0x215   :  { %v661_v15 = vpop.permute.xlu0 %660 }
 0x216   :  { %vm664_vm11 = vcmp.ne.s32.totalorder %v661_v15, 0  ;;  %v1194_v15 = vmax.f32 %v3100_v14, 1e-24  ;;  %v3106_v14 = vld [vmem:[#allocation35_spill] sm:$0xff] }
 0x217   :  { %v2757_v3 = vsel %vm664_vm11, 0, %v2099_v0 }
 0x218   :  { %v1573_v55 = vmul.f32 %v2757_v3, %v2757_v3  ;;  %1949 = vrcp.f32 %v1194_v15  ;;  %v1415_v15 = vmul.f32 %v2741_v33, %v3106_v14  ;;  %v3111_v14 = vld [vmem:[#allocation10_spill] sm:$0xff] }
 0x219   :  { %v677_v34 = vpop.permute.xlu0 %676 }
 0x21a   :  { %vm680_vm12 = vcmp.ne.s32.totalorder %v677_v34, 0  ;;  %v1603_v52 = vsel %vm1133_vm2, %v1573_v55, 0.0  ;;  %v1715_v34 = vsel %vm1133_vm2, %v1685_v26, 0.0  ;;  %v1718_v26 = vsel %vm1133_vm2, %v1686_v43, 0.0  ;;  %v3108_v43 = vld [vmem:[#allocation34_spill] sm:$0xff] }
 0x21b   :  { %v2773_v60 = vsel %vm680_vm12, 0, %v2099_v0  ;;  %1604 = vadd.xlane.f32.xlu0 %v1603_v52  ;;  %v3102_v52 = vld [vmem:[#allocation7_spill] sm:$0xff] }
 0x21c   :  { %v1574_v2 = vmul.f32 %v2773_v60, %v2773_v60  ;;  %v1432_v6 = vmul.f32 %v1416_v29, %v3102_v52  ;;  %v1320_v23 = vmul.f32 %v1304_v4, %v3102_v52  ;;  %v1196_v4 = vmax.f32 %v3108_v43, 1e-24 }
 0x21d   :  { %v709_v12 = vpop.permute.xlu0 %708 }
 0x21e   :  { %v1606_v10 = vsel %vm1133_vm2, %v1574_v2, 0.0  ;;  %vm712_vm13 = vcmp.ne.s32.totalorder %v709_v12, 0  ;;  %v3103_v2 = vld [vmem:[#allocation19_spill] sm:$0xff]  ;;  %v1197_v12 = vmax.f32 %v3105_v8, 1e-24  ;;  %v2816_v29 = vsub.f32 %v3107_v18, %v1432_v6 }
 0x21f   :  { %1495 = vadd.xlane.f32.xlu0 %v1494_v48  ;;  %1607 = vadd.xlane.f32.xlu1 %v1606_v10  ;;  %v2793_v30 = vsel %vm712_vm13, 0, %v2099_v0  ;;  %v2805_v48 = vsub.f32 %v3103_v2, %v1321_v50  ;;  %v1431_v6 = vmul.f32 %v1415_v15, %v3092_v61 }
 0x220   :  { %v1576_v28 = vmul.f32 %v2793_v30, %v2793_v30  ;;  %1951 = vrcp.f32 %v1197_v12 }
 0x221   :  { %v725_v55 = vpop.permute.xlu0 %724  ;;  %3104 = vst [vmem:[#allocation12_spill] sm:$0xff] %v2805_v48  ;;  %1953 = vrcp.f32 %v1196_v4  ;;  %v3113_v4 = vld [vmem:[#allocation23_spill] sm:$0xff] }
 0x222   :  { %v1612_v10 = vsel %vm1133_vm2, %v1576_v28, 0.0  ;;  %v3109_v28 = vld [vmem:[#allocation17_spill] sm:$0xff]  ;;  %v1950_v33 = vpop.eup %1949  ;;  %vm728_vm0 = vcmp.ne.s32.totalorder %v725_v55, 0 }
 0x223   :  { %1716 = vadd.xlane.f32.xlu0 %v1715_v34  ;;  %1498 = vadd.xlane.f32.xlu1 %v1497_v20  ;;  %v1307_v34 = vmul.f32 %v2811_v47, %v2680_v32  ;;  %v1465_v20 = vmul.f32 %v2805_v48, %v2805_v48  ;;  %v2826_v52 = vsub.f32 %v3109_v28, %v1320_v23 }
 0x224   :  { %v1688_v32 = vmul.f32 %v2816_v29, %v2816_v29  ;;  %v1418_v18 = vmul.f32 %v1950_v33, %v2694_v36  ;;  %v1306_v36 = vmul.f32 %v1950_v33, %v2611_v13  ;;  %v1417_v33 = vmul.f32 %v2777_v21, %v2666_v16  ;;  %v3116_v21 = vld [vmem:[#allocation21_spill] sm:$0xff] }
 0x225   :  { %v1293_v62 = vpop.xlane.xlu1 %1292  ;;  %v741_v25 = vpop.permute.xlu0 %740  ;;  %v1503_v12 = vsel %vm1133_vm2, %v1465_v20, 0.0  ;;  %v1464_v15 = vmul.f32 %v2826_v52, %v2826_v52 }
 0x226   :  { %vm744_vm14 = vcmp.ne.s32.totalorder %v741_v25, 0  ;;  %v1323_v25 = vmul.f32 %v1307_v34, %v3111_v14  ;;  %v3112_v34 = vld [vmem:[#allocation18_spill] sm:$0xff]  ;;  %v1724_v20 = vsel %vm1133_vm2, %v1688_v32, 0.0  ;;  %v2862_v32 = vsel %vm728_vm0, 0, %v2099_v0 }
 0x227   :  { %1719 = vadd.xlane.f32.xlu1 %v1718_v26  ;;  %v2830_v26 = vsel %vm744_vm14, 0, %v2099_v0  ;;  %v2847_v43 = vsub.f32 %v3112_v34, %v1431_v6  ;;  %v1500_v24 = vsel %vm1133_vm2, %v1464_v15, 0.0 }
 0x228   :  { %3110 = vst [vmem:[#allocation33_spill] sm:$0xff] %v2830_v26  ;;  %v2852_v28 = vsub.f32 %v3113_v4, %v1323_v25  ;;  %v3115_v25 = vld [vmem:[#allocation24_spill] sm:$0xff] }
 0x229   :  { %v2818_v50 = vpop.xlane.xlu1 %1404  ;;  %v757_v8 = vpop.permute.xlu0 %756  ;;  %v1687_v55 = vmul.f32 %v2847_v43, %v2847_v43 }
 0x22a   :  { %v1952_v34 = vpop.eup %1951  ;;  %vm760_vm3 = vcmp.ne.s32.totalorder %v757_v8, 0  ;;  %v3122_v8 = vld [vmem:[#allocation27_spill] sm:$0xff] }
 0x22b   :  { %1613 = vadd.xlane.f32.xlu1 %v1612_v10  ;;  %v1578_v10 = vmul.f32 %v2830_v26, %v2830_v26  ;;  %v1954_v16 = vpop.eup %1953 }
 0x22d   :  { %v693_v2 = vpop.permute.xlu1 %692  ;;  %v773_v26 = vpop.permute.xlu0 %772  ;;  %v1618_v6 = vsel %vm1133_vm2, %v1578_v10, 0.0  ;;  %v1577_v10 = vmul.f32 %v2862_v32, %v2862_v32 }
 0x22e   :  { %vm696_vm15 = vcmp.ne.s32.totalorder %v693_v2, 0  ;;  %v3114_v2 = vld [vmem:[#allocation9_spill] sm:$0xff]  ;;  %vm776_vm1 = vcmp.ne.s32.totalorder %v773_v26, 0 }
 0x22f   :  { %v2838_v23 = vsel %vm696_vm15, 0, %v2099_v0  ;;  %1504 = vadd.xlane.f32.xlu1 %v1503_v12  ;;  %v1434_v12 = vmul.f32 %v1418_v18, %v3114_v2  ;;  %v1322_v13 = vmul.f32 %v1306_v36, %v3114_v2  ;;  %v1309_v18 = vmul.f32 %v1952_v34, %v1293_v62  ;;  %v3117_v2 = vld [vmem:[#allocation13_spill] sm:$0xff] }
 0x230   :  { %v1575_v61 = vmul.f32 %v2838_v23, %v2838_v23  ;;  %v1433_v36 = vmul.f32 %v1417_v33, %v3101_v49  ;;  %v2879_v4 = vsel %vm776_vm1, 0, %v2099_v0  ;;  %v1420_v62 = vmul.f32 %v1954_v16, %v2747_v54 }
 0x231   :  { %v2874_v15 = vsub.f32 %v3116_v21, %v1322_v13  ;;  %v1325_v26 = vmul.f32 %v1309_v18, %v3117_v2  ;;  %v1615_v49 = vsel %vm1133_vm2, %v1577_v10, 0.0  ;;  %v3118_v13 = vld [vmem:[#allocation22_spill] sm:$0xff] }
 0x232   :  { %v1609_v48 = vsel %vm1133_vm2, %v1575_v61, 0.0  ;;  %v1467_v61 = vmul.f32 %v2852_v28, %v2852_v28  ;;  %v2890_v33 = vsub.f32 %v3118_v13, %v1433_v36  ;;  %v2902_v36 = vsel %vm760_vm3, 0, %v2099_v0  ;;  %v3123_v13 = vld [vmem:[#allocation25_spill] sm:$0xff] }
 0x233   :  { %1610 = vadd.xlane.f32.xlu0 %v1609_v48  ;;  %1725 = vadd.xlane.f32.xlu1 %v1724_v20  ;;  %v2867_v48 = vsub.f32 %v3115_v25, %v1434_v12  ;;  %v1721_v20 = vsel %vm1133_vm2, %v1687_v55, 0.0  ;;  %v1308_v55 = vmul.f32 %v1954_v16, %v2701_v31  ;;  %v1466_v54 = vmul.f32 %v2874_v15, %v2874_v15  ;;  %v3119_v25 = vld [vmem:[#allocation11_spill] sm:$0xff] }
 0x234   :  { %v1436_v18 = vmul.f32 %v1420_v62, %v3119_v25  ;;  %v1689_v16 = vmul.f32 %v2890_v33, %v2890_v33 }
 0x235   :  { %v1690_v12 = vmul.f32 %v2867_v48, %v2867_v48  ;;  %v1506_v31 = vsel %vm1133_vm2, %v1466_v54, 0.0  ;;  %v1324_v62 = vmul.f32 %v1308_v55, %v3119_v25 }
 0x237   :  { %1501 = vadd.xlane.f32.xlu0 %v1500_v24  ;;  %1619 = vadd.xlane.f32.xlu1 %v1618_v6  ;;  %v1509_v24 = vsel %vm1133_vm2, %v1467_v61, 0.0  ;;  %v1580_v6 = vmul.f32 %v2879_v4, %v2879_v4  ;;  %v3120_v61 = vld [vmem:[#allocation28_spill] sm:$0xff]  ;;  %v2919_v54 = vsub.f32 %v3123_v13, %v1324_v62 }
 0x238   :  { %v2897_v21 = vsub.f32 %v3120_v61, %v1325_v26  ;;  %v1419_v26 = vmul.f32 %v2811_v47, %v2738_v59  ;;  %v3124_v61 = vld [vmem:[#allocation26_spill] sm:$0xff] }
 0x239   :  { %v1624_v10 = vsel %vm1133_vm2, %v1580_v6, 0.0  ;;  %v1579_v6 = vmul.f32 %v2902_v36, %v2902_v36 }
 0x23a   :  { %3121 = vst [vmem:[#allocation14_spill] sm:$0xff] %v2897_v21  ;;  %v1435_v55 = vmul.f32 %v1419_v26, %v3111_v14  ;;  %v1468_v14 = vmul.f32 %v2919_v54, %v2919_v54 }
 0x23b   :  { %1722 = vadd.xlane.f32.xlu0 %v1721_v20  ;;  %1510 = vadd.xlane.f32.xlu1 %v1509_v24  ;;  %v1730_v20 = vsel %vm1133_vm2, %v1690_v12, 0.0  ;;  %v2911_v24 = vsub.f32 %v3122_v8, %v1436_v18  ;;  %v1469_v12 = vmul.f32 %v2897_v21, %v2897_v21  ;;  %v1621_v25 = vsel %vm1133_vm2, %v1579_v6, 0.0  ;;  %v789_v18 = vpop.permute.xlu1 %788 }
 0x23c   :  { %vm792_vm4 = vcmp.ne.s32.totalorder %v789_v18, 0  ;;  %v1512_v62 = vsel %vm1133_vm2, %v1468_v14, 0.0 }
 0x23d   :  { %v1515_v59 = vsel %vm1133_vm2, %v1469_v12, 0.0  ;;  %v1692_v47 = vmul.f32 %v2911_v24, %v2911_v24  ;;  %v2938_v8 = vsel %vm792_vm4, 0, %v2099_v0 }
 0x23e   :  { %v1581_v12 = vmul.f32 %v2938_v8, %v2938_v8 }
 0x23f   :  { %1616 = vadd.xlane.f32.xlu0 %v1615_v49  ;;  %1731 = vadd.xlane.f32.xlu1 %v1730_v20  ;;  %v1727_v49 = vsel %vm1133_vm2, %v1689_v16, 0.0  ;;  %v2927_v20 = vsub.f32 %v3124_v61, %v1435_v55 }
 0x241   :  { %v1691_v26 = vmul.f32 %v2927_v20, %v2927_v20 }
 0x243   :  { %1507 = vadd.xlane.f32.xlu0 %v1506_v31  ;;  %1625 = vadd.xlane.f32.xlu1 %v1624_v10  ;;  %v1421_v10 = vmul.f32 %v1952_v34, %v2818_v50  ;;  %v1736_v31 = vsel %vm1133_vm2, %v1692_v47, 0.0  ;;  %v3125_v50 = vld [vmem:[#allocation29_spill] sm:$0xff]  ;;  %v1733_v6 = vsel %vm1133_vm2, %v1691_v26, 0.0 }
 0x245   :  { %v1437_v16 = vmul.f32 %v1421_v10, %v3117_v2  ;;  %v1627_v2 = vsel %vm1133_vm2, %v1581_v12, 0.0 }
 0x247   :  { %1728 = vadd.xlane.f32.xlu0 %v1727_v49  ;;  %1516 = vadd.xlane.f32.xlu1 %v1515_v59  ;;  %v2941_v34 = vsub.f32 %v3125_v50, %v1437_v16 }
 0x249   :  { %3126 = vst [vmem:[#allocation15_spill] sm:$0xff] %v2941_v34  ;;  %v1693_v49 = vmul.f32 %v2941_v34, %v2941_v34 }
 0x24b   :  { %1622 = vadd.xlane.f32.xlu0 %v1621_v25  ;;  %1737 = vadd.xlane.f32.xlu1 %v1736_v31  ;;  %v1739_v13 = vsel %vm1133_vm2, %v1693_v49, 0.0 }
 0x24f   :  { %1513 = vadd.xlane.f32.xlu0 %v1512_v62 }
 0x253   :  { %1734 = vadd.xlane.f32.xlu0 %v1733_v6 }
 0x257   :  { %1628 = vadd.xlane.f32.xlu0 %v1627_v2 }
 0x25b   :  { %1740 = vadd.xlane.f32.xlu0 %v1739_v13 }
 0x25e   :  { %v1472_v0 = vpop.xlane.xlu0 %1471 }
 0x25f   :  { %v1518_v55 = vmax.f32 %v1472_v0, 1e-24 }
 0x261   :  { %1955 = vrsqrt.f32 %v1518_v55 }
 0x262   :  { %v1584_v59 = vpop.xlane.xlu1 %1583  ;;  %v1475_v47 = vpop.xlane.xlu0 %1474 }
 0x263   :  { %v1630_v25 = vmax.f32 %v1584_v59, 1e-24  ;;  %v1519_v14 = vmax.f32 %v1475_v47, 1e-24 }
 0x265   :  { %1957 = vrsqrt.f32 %v1630_v25 }
 0x266   :  { %v1696_v18 = vpop.xlane.xlu1 %1695  ;;  %v1587_v61 = vpop.xlane.xlu0 %1586 }
 0x267   :  { %v1742_v10 = vmax.f32 %v1696_v18, 1e-24  ;;  %v1631_v31 = vmax.f32 %v1587_v61, 1e-24 }
 0x269   :  { %1959 = vrsqrt.f32 %v1742_v10 }
 0x26a   :  { %v1590_v16 = vpop.xlane.xlu1 %1589  ;;  %v1478_v62 = vpop.xlane.xlu0 %1477  ;;  %1961 = vrsqrt.f32 %v1631_v31 }
 0x26b   :  { %v1632_v26 = vmax.f32 %v1590_v16, 1e-24  ;;  %v1520_v50 = vmax.f32 %v1478_v62, 1e-24  ;;  %1963 = vrsqrt.f32 %v1519_v14  ;;  %v1956_v12 = vpop.eup %1955 }
 0x26c   :  { %v1550_v47 = vmul.f32 %v1956_v12, %v2557_v17 }
 0x26d   :  { %1965 = vrsqrt.f32 %v1632_v26 }
 0x26e   :  { %v1481_v6 = vpop.xlane.xlu1 %1480  ;;  %v1699_v2 = vpop.xlane.xlu0 %1698  ;;  %1967 = vrsqrt.f32 %v1520_v50 }
 0x26f   :  { %v1958_v49 = vpop.eup %1957  ;;  %v1743_v13 = vmax.f32 %v1699_v2, 1e-24  ;;  %v1521_v14 = vmax.f32 %v1481_v6, 1e-24 }
 0x270   :  { %v1662_v0 = vmul.f32 %v1958_v49, %v2575_v1 }
 0x271   :  { %1969 = vrsqrt.f32 %v1743_v13 }
 0x272   :  { %v1702_v55 = vpop.xlane.xlu1 %1701  ;;  %v1593_v59 = vpop.xlane.xlu0 %1592  ;;  %v1790_v31 = vadd.f32 %v1662_v0, %v1550_v47 }
 0x273   :  { %v1960_v25 = vpop.eup %1959  ;;  %v1744_v18 = vmax.f32 %v1702_v55, 1e-24  ;;  %v1633_v61 = vmax.f32 %v1593_v59, 1e-24 }
 0x274   :  { %v1774_v10 = vmul.f32 %v1960_v25, %v2581_v63  ;;  %v1962_v16 = vpop.eup %1961 }
 0x275   :  { %1971 = vrsqrt.f32 %v1744_v18  ;;  %v1964_v2 = vpop.eup %1963  ;;  %v1663_v17 = vmul.f32 %v1962_v16, %v2589_v58 }
 0x276   :  { %v1596_v62 = vpop.xlane.xlu1 %1595  ;;  %v1484_v26 = vpop.xlane.xlu0 %1483  ;;  %v1806_v50 = vsub.f32 %v1790_v31, %v1774_v10  ;;  %1973 = vrsqrt.f32 %v1633_v61  ;;  %v1551_v55 = vmul.f32 %v1964_v2, %v2569_v40 }
 0x277   :  { %v1634_v34 = vmax.f32 %v1596_v62, 1e-24  ;;  %v1522_v1 = vmax.f32 %v1484_v26, 1e-24  ;;  %v1966_v49 = vpop.eup %1965  ;;  %1975 = vrsqrt.f32 %v1521_v14 }
 0x278   :  { %v1822_v13 = vand.u32 2147483647, %v1806_v50  ;;  %v1968_v21 = vpop.eup %1967  ;;  %v1664_v25 = vmul.f32 %v1966_v49, %v2607_v44  ;;  %v1791_v61 = vadd.f32 %v1663_v17, %v1551_v55 }
 0x279   :  { %1977 = vrsqrt.f32 %v1634_v34  ;;  %v1552_v47 = vmul.f32 %v1968_v21, %v2598_v46 }
 0x27a   :  { %v1487_v12 = vpop.xlane.xlu1 %1486  ;;  %v1705_v63 = vpop.xlane.xlu0 %1704  ;;  %v1838_v6 = vsel %vm1133_vm2, %v1822_v13, 0.0  ;;  %1979 = vrsqrt.f32 %v1522_v1 }
 0x27b   :  { %v1745_v0 = vmax.f32 %v1705_v63, 1e-24  ;;  %1839 = vadd.xlane.f32.xlu1 %v1838_v6  ;;  %v1970_v59 = vpop.eup %1969  ;;  %v1792_v26 = vadd.f32 %v1664_v25, %v1552_v47  ;;  %v1523_v50 = vmax.f32 %v1487_v12, 1e-24 }
 0x27c   :  { %v1775_v18 = vmul.f32 %v1970_v59, %v2620_v37 }
 0x27d   :  { %1981 = vrsqrt.f32 %v1745_v0 }
 0x27e   :  { %v1708_v58 = vpop.xlane.xlu1 %1707  ;;  %v1599_v34 = vpop.xlane.xlu0 %1598  ;;  %v1807_v16 = vsub.f32 %v1791_v61, %v1775_v18 }
 0x27f   :  { %v1972_v10 = vpop.eup %1971  ;;  %v1746_v31 = vmax.f32 %v1708_v58, 1e-24  ;;  %v1635_v14 = vmax.f32 %v1599_v34, 1e-24 }
 0x280   :  { %v1776_v62 = vmul.f32 %v1972_v10, %v2629_v56  ;;  %v1823_v40 = vand.u32 2147483647, %v1807_v16  ;;  %v1974_v2 = vpop.eup %1973 }
 0x281   :  { %1983 = vrsqrt.f32 %v1746_v31  ;;  %v1976_v44 = vpop.eup %1975  ;;  %v1665_v17 = vmul.f32 %v1974_v2, %v2638_v5 }
 0x282   :  { %v1490_v46 = vpop.xlane.xlu0 %1489  ;;  %v1808_v21 = vsub.f32 %v1792_v26, %v1776_v62  ;;  %1985 = vrsqrt.f32 %v1635_v14  ;;  %v1841_v37 = vsel %vm1133_vm2, %v1823_v40, 0.0  ;;  %v1553_v0 = vmul.f32 %v1976_v44, %v2623_v35 }
 0x283   :  { %v1978_v1 = vpop.eup %1977  ;;  %1842 = vadd.xlane.f32.xlu0 %v1841_v37  ;;  %1987 = vrsqrt.f32 %v1523_v50  ;;  %v1524_v58 = vmax.f32 %v1490_v46, 1e-24 }
 0x284   :  { %v1824_v49 = vand.u32 2147483647, %v1808_v21  ;;  %v1980_v13 = vpop.eup %1979  ;;  %v1666_v25 = vmul.f32 %v1978_v1, %v2654_v9  ;;  %v1793_v61 = vadd.f32 %v1665_v17, %v1553_v0 }
 0x285   :  { %v1554_v47 = vmul.f32 %v1980_v13, %v2646_v7 }
 0x286   :  { %v1711_v63 = vpop.xlane.xlu0 %1710  ;;  %v1844_v56 = vsel %vm1133_vm2, %v1824_v49, 0.0 }
 0x287   :  { %v1747_v12 = vmax.f32 %v1711_v63, 1e-24  ;;  %v1602_v6 = vpop.xlane.xlu1 %1601  ;;  %1845 = vadd.xlane.f32.xlu1 %v1844_v56  ;;  %v1982_v55 = vpop.eup %1981  ;;  %v1794_v14 = vadd.f32 %v1666_v25, %v1554_v47 }
 0x288   :  { %v1636_v59 = vmax.f32 %v1602_v6, 1e-24  ;;  %v1777_v18 = vmul.f32 %v1982_v55, %v2661_v19 }
 0x289   :  { %1989 = vrsqrt.f32 %v1747_v12 }
 0x28a   :  { %v1809_v10 = vsub.f32 %v1793_v61, %v1777_v18  ;;  %1991 = vrsqrt.f32 %v1636_v59 }
 0x28b   :  { %v1984_v5 = vpop.eup %1983  ;;  %v1493_v34 = vpop.xlane.xlu1 %1492  ;;  %1993 = vrsqrt.f32 %v1524_v58 }
 0x28c   :  { %v1778_v31 = vmul.f32 %v1984_v5, %v2676_v45  ;;  %v1986_v16 = vpop.eup %1985  ;;  %v1825_v35 = vand.u32 2147483647, %v1809_v10  ;;  %v1525_v47 = vmax.f32 %v1493_v34, 1e-24 }
 0x28d   :  { %v1988_v26 = vpop.eup %1987  ;;  %v1667_v40 = vmul.f32 %v1986_v16, %v2686_v38 }
 0x28e   :  { %v1810_v62 = vsub.f32 %v1794_v14, %v1778_v31  ;;  %v1847_v9 = vsel %vm1133_vm2, %v1825_v35, 0.0  ;;  %v1555_v46 = vmul.f32 %v1988_v26, %v2670_v42 }
 0x28f   :  { %v1714_v7 = vpop.xlane.xlu1 %1713  ;;  %1848 = vadd.xlane.f32.xlu0 %v1847_v9 }
 0x290   :  { %v1748_v50 = vmax.f32 %v1714_v7, 1e-24  ;;  %v1826_v19 = vand.u32 2147483647, %v1810_v62  ;;  %v1795_v44 = vadd.f32 %v1667_v40, %v1555_v46 }
 0x292   :  { %1995 = vrsqrt.f32 %v1748_v50  ;;  %v1850_v2 = vsel %vm1133_vm2, %v1826_v19, 0.0 }
 0x293   :  { %v1990_v45 = vpop.eup %1989  ;;  %1851 = vadd.xlane.f32.xlu1 %v1850_v2 }
 0x294   :  { %v1779_v21 = vmul.f32 %v1990_v45, %v2708_v22  ;;  %v1992_v37 = vpop.eup %1991 }
 0x295   :  { %v1994_v49 = vpop.eup %1993  ;;  %v1668_v17 = vmul.f32 %v1992_v37, %v2720_v39 }
 0x296   :  { %v1811_v1 = vsub.f32 %v1795_v44, %v1779_v21  ;;  %v1556_v38 = vmul.f32 %v1994_v49, %v2698_v53 }
 0x298   :  { %v1827_v13 = vand.u32 2147483647, %v1811_v1  ;;  %v1796_v42 = vadd.f32 %v1668_v17, %v1556_v38 }
 0x29a   :  { %v1853_v63 = vsel %vm1133_vm2, %v1827_v13, 0.0 }
 0x29b   :  { %1854 = vadd.xlane.f32.xlu0 %v1853_v63 }
 0x29c   :  { %v1996_v56 = vpop.eup %1995 }
 0x29d   :  { %v1780_v12 = vmul.f32 %v1996_v56, %v2729_v51 }
 0x29f   :  { %v1812_v6 = vsub.f32 %v1796_v42, %v1780_v12 }
 0x2a1   :  { %v1828_v0 = vand.u32 2147483647, %v1812_v6 }
 0x2a3   :  { %v1856_v22 = vsel %vm1133_vm2, %v1828_v0, 0.0 }
 0x2a4   :  { %1857 = vadd.xlane.f32.xlu1 %v1856_v22 }
 0x2a8   :  { %v1605_v55 = vpop.xlane.xlu0 %1604 }
 0x2a9   :  { %v1637_v59 = vmax.f32 %v1605_v55, 1e-24 }
 0x2ab   :  { %1997 = vrsqrt.f32 %v1637_v59 }
 0x2ac   :  { %v1608_v25 = vpop.xlane.xlu1 %1607  ;;  %v1496_v18 = vpop.xlane.xlu0 %1495  ;;  %1999 = vrsqrt.f32 %v1525_v47 }
 0x2ad   :  { %v1638_v39 = vmax.f32 %v1608_v25, 1e-24  ;;  %v1526_v61 = vmax.f32 %v1496_v18, 1e-24 }
 0x2af   :  { %2001 = vrsqrt.f32 %v1638_v39 }
 0x2b0   :  { %v1499_v53 = vpop.xlane.xlu1 %1498  ;;  %v1717_v58 = vpop.xlane.xlu0 %1716  ;;  %2003 = vrsqrt.f32 %v1526_v61 }
 0x2b1   :  { %v1749_v51 = vmax.f32 %v1717_v58, 1e-24  ;;  %v1527_v46 = vmax.f32 %v1499_v53, 1e-24 }
 0x2b3   :  { %2005 = vrsqrt.f32 %v1749_v51 }
 0x2b4   :  { %v1720_v5 = vpop.xlane.xlu1 %1719 }
 0x2b5   :  { %v1750_v10 = vmax.f32 %v1720_v5, 1e-24  ;;  %v1998_v31 = vpop.eup %1997 }
 0x2b6   :  { %v2000_v16 = vpop.eup %1999  ;;  %v1669_v62 = vmul.f32 %v1998_v31, %v2757_v3 }
 0x2b7   :  { %2007 = vrsqrt.f32 %v1750_v10  ;;  %v1557_v7 = vmul.f32 %v2000_v16, %v2717_v57 }
 0x2b8   :  { %v1614_v14 = vpop.xlane.xlu1 %1613  ;;  %2009 = vrsqrt.f32 %v1527_v46 }
 0x2b9   :  { %v2002_v35 = vpop.eup %2001  ;;  %v1797_v2 = vadd.f32 %v1669_v62, %v1557_v7  ;;  %v1640_v37 = vmax.f32 %v1614_v14, 1e-24 }
 0x2ba   :  { %v2004_v34 = vpop.eup %2003  ;;  %v1670_v19 = vmul.f32 %v2002_v35, %v2773_v60 }
 0x2bb   :  { %v1558_v50 = vmul.f32 %v2004_v34, %v2753_v11  ;;  %2011 = vrsqrt.f32 %v1640_v37 }
 0x2bc   :  { %v1505_v26 = vpop.xlane.xlu1 %1504 }
 0x2bd   :  { %v2006_v9 = vpop.eup %2005  ;;  %v1798_v13 = vadd.f32 %v1670_v19, %v1558_v50  ;;  %v1529_v0 = vmax.f32 %v1505_v26, 1e-24 }
 0x2be   :  { %v1781_v40 = vmul.f32 %v2006_v9, %v2762_v27  ;;  %v3127_v9 = vld [vmem:[#allocation6_spill] sm:$0xff] }
 0x2c0   :  { %v1726_v45 = vpop.xlane.xlu1 %1725  ;;  %v1611_v21 = vpop.xlane.xlu0 %1610  ;;  %v1813_v1 = vsub.f32 %v1797_v2, %v1781_v40 }
 0x2c1   :  { %v2008_v44 = vpop.eup %2007  ;;  %v1639_v49 = vmax.f32 %v1611_v21, 1e-24  ;;  %v1752_v17 = vmax.f32 %v1726_v45, 1e-24 }
 0x2c2   :  { %v1782_v3 = vmul.f32 %v2008_v44, %v2785_v41  ;;  %v1829_v57 = vand.u32 2147483647, %v1813_v1  ;;  %v2010_v47 = vpop.eup %2009 }
 0x2c3   :  { %2013 = vrsqrt.f32 %v1639_v49  ;;  %v1559_v50 = vmul.f32 %v2010_v47, %v3127_v9 }
 0x2c4   :  { %v1620_v63 = vpop.xlane.xlu1 %1619  ;;  %v1502_v11 = vpop.xlane.xlu0 %1501  ;;  %v1814_v38 = vsub.f32 %v1798_v13, %v1782_v3  ;;  %v1859_v27 = vsel %vm1133_vm2, %v1829_v57, 0.0  ;;  %2015 = vrsqrt.f32 %v1752_v17 }
 0x2c5   :  { %v1528_v60 = vmax.f32 %v1502_v11, 1e-24  ;;  %1860 = vadd.xlane.f32.xlu0 %v1859_v27  ;;  %v1642_v59 = vmax.f32 %v1620_v63, 1e-24  ;;  %v2012_v18 = vpop.eup %2011  ;;  %v3128_v27 = vld [vmem:[#allocation33_spill] sm:$0xff] }
 0x2c6   :  { %v1830_v56 = vand.u32 2147483647, %v1814_v38  ;;  %v1672_v14 = vmul.f32 %v2012_v18, %v2793_v30 }
 0x2c7   :  { %2017 = vrsqrt.f32 %v1528_v60 }
 0x2c8   :  { %v1511_v12 = vpop.xlane.xlu1 %1510  ;;  %v1723_v42 = vpop.xlane.xlu0 %1722  ;;  %v1862_v41 = vsel %vm1133_vm2, %v1830_v56, 0.0 }
 0x2c9   :  { %v1751_v6 = vmax.f32 %v1723_v42, 1e-24  ;;  %1863 = vadd.xlane.f32.xlu1 %v1862_v41  ;;  %v1531_v40 = vmax.f32 %v1511_v12, 1e-24 }
 0x2cb   :  { %2019 = vrsqrt.f32 %v1751_v6 }
 0x2cc   :  { %v1732_v22 = vpop.xlane.xlu1 %1731  ;;  %v1617_v55 = vpop.xlane.xlu0 %1616  ;;  %2021 = vrsqrt.f32 %v1529_v0 }
 0x2cd   :  { %v1641_v25 = vmax.f32 %v1617_v55, 1e-24  ;;  %v1754_v39 = vmax.f32 %v1732_v22, 1e-24  ;;  %v2014_v61 = vpop.eup %2013  ;;  %2023 = vrsqrt.f32 %v1642_v59  ;;  %v3129_v22 = vld [vmem:[#allocation12_spill] sm:$0xff] }
 0x2ce   :  { %v2016_v51 = vpop.eup %2015  ;;  %v1671_v16 = vmul.f32 %v2014_v61, %v2838_v23 }
 0x2cf   :  { %2025 = vrsqrt.f32 %v1641_v25  ;;  %v1784_v26 = vmul.f32 %v2016_v51, %v2816_v29 }
 0x2d0   :  { %v1626_v53 = vpop.xlane.xlu1 %1625  ;;  %v1508_v58 = vpop.xlane.xlu0 %1507  ;;  %2027 = vrsqrt.f32 %v1754_v39  ;;  %v1799_v45 = vadd.f32 %v1671_v16, %v1559_v50 }
 0x2d1   :  { %v1530_v5 = vmax.f32 %v1508_v58, 1e-24  ;;  %v2018_v10 = vpop.eup %2017 }
 0x2d2   :  { %v1560_v31 = vmul.f32 %v2018_v10, %v2826_v52  ;;  %v1644_v52 = vmax.f32 %v1626_v53, 1e-24 }
 0x2d3   :  { %2029 = vrsqrt.f32 %v1530_v5 }
 0x2d4   :  { %v1517_v35 = vpop.xlane.xlu1 %1516  ;;  %v1729_v34 = vpop.xlane.xlu0 %1728  ;;  %v1800_v7 = vadd.f32 %v1672_v14, %v1560_v31 }
 0x2d5   :  { %v1753_v62 = vmax.f32 %v1729_v34, 1e-24  ;;  %v2020_v19 = vpop.eup %2019  ;;  %v1533_v47 = vmax.f32 %v1517_v35, 1e-24 }
 0x2d6   :  { %v1816_v2 = vsub.f32 %v1800_v7, %v1784_v26  ;;  %v1783_v46 = vmul.f32 %v2020_v19, %v2847_v43  ;;  %v2022_v1 = vpop.eup %2021 }
 0x2d7   :  { %2031 = vrsqrt.f32 %v1753_v62  ;;  %v2024_v3 = vpop.eup %2023  ;;  %v1561_v55 = vmul.f32 %v2022_v1, %v3129_v22 }
 0x2d8   :  { %v1738_v30 = vpop.xlane.xlu1 %1737  ;;  %v1623_v21 = vpop.xlane.xlu0 %1622  ;;  %v1832_v44 = vand.u32 2147483647, %v1816_v2  ;;  %v1815_v37 = vsub.f32 %v1799_v45, %v1783_v46  ;;  %2033 = vrsqrt.f32 %v1531_v40  ;;  %v1674_v56 = vmul.f32 %v2024_v3, %v3128_v27 }
 0x2d9   :  { %v1643_v23 = vmax.f32 %v1623_v21, 1e-24  ;;  %v1756_v49 = vmax.f32 %v1738_v30, 1e-24  ;;  %v2026_v17 = vpop.eup %2025  ;;  %2035 = vrsqrt.f32 %v1644_v52 }
 0x2da   :  { %v1868_v29 = vsel %vm1133_vm2, %v1832_v44, 0.0  ;;  %v1831_v13 = vand.u32 2147483647, %v1815_v37  ;;  %v2028_v43 = vpop.eup %2027  ;;  %v1673_v12 = vmul.f32 %v2026_v17, %v2862_v32  ;;  %v3131_v37 = vld [vmem:[#allocation15_spill] sm:$0xff] }
 0x2db   :  { %1869 = vadd.xlane.f32.xlu1 %v1868_v29  ;;  %2037 = vrsqrt.f32 %v1643_v23  ;;  %v1786_v6 = vmul.f32 %v2028_v43, %v2867_v48  ;;  %v3130_v23 = vld [vmem:[#allocation14_spill] sm:$0xff] }
 0x2dc   :  { %v1514_v57 = vpop.xlane.xlu0 %1513  ;;  %v1865_v11 = vsel %vm1133_vm2, %v1831_v13, 0.0  ;;  %2039 = vrsqrt.f32 %v1756_v49  ;;  %v1801_v39 = vadd.f32 %v1673_v12, %v1561_v55 }
 0x2dd   :  { %v1532_v63 = vmax.f32 %v1514_v57, 1e-24  ;;  %v2030_v38 = vpop.eup %2029  ;;  %1866 = vadd.xlane.f32.xlu0 %v1865_v11 }
 0x2de   :  { %v1562_v60 = vmul.f32 %v2030_v38, %v2874_v15 }
 0x2df   :  { %2041 = vrsqrt.f32 %v1532_v63 }
 0x2e0   :  { %v1735_v42 = vpop.xlane.xlu0 %1734  ;;  %v1802_v0 = vadd.f32 %v1674_v56, %v1562_v60 }
 0x2e1   :  { %v1755_v41 = vmax.f32 %v1735_v42, 1e-24  ;;  %v2032_v59 = vpop.eup %2031 }
 0x2e2   :  { %v1818_v25 = vsub.f32 %v1802_v0, %v1786_v6  ;;  %v1785_v18 = vmul.f32 %v2032_v59, %v2890_v33  ;;  %v2034_v15 = vpop.eup %2033 }
 0x2e3   :  { %2043 = vrsqrt.f32 %v1755_v41  ;;  %v2036_v32 = vpop.eup %2035  ;;  %v1563_v50 = vmul.f32 %v2034_v15, %v2852_v28 }
 0x2e4   :  { %v1629_v61 = vpop.xlane.xlu0 %1628  ;;  %v1834_v58 = vand.u32 2147483647, %v1818_v25  ;;  %v1817_v51 = vsub.f32 %v1801_v39, %v1785_v18  ;;  %2045 = vrsqrt.f32 %v1533_v47  ;;  %v1676_v62 = vmul.f32 %v2036_v32, %v2879_v4 }
 0x2e5   :  { %v1645_v53 = vmax.f32 %v1629_v61, 1e-24  ;;  %v2038_v5 = vpop.eup %2037 }
 0x2e6   :  { %v1874_v48 = vsel %vm1133_vm2, %v1834_v58, 0.0  ;;  %v1833_v10 = vand.u32 2147483647, %v1817_v51  ;;  %v2040_v31 = vpop.eup %2039  ;;  %v1675_v26 = vmul.f32 %v2038_v5, %v2902_v36 }
 0x2e7   :  { %2047 = vrsqrt.f32 %v1645_v53  ;;  %1875 = vadd.xlane.f32.xlu1 %v1874_v48  ;;  %v1788_v7 = vmul.f32 %v2040_v31, %v2911_v24 }
 0x2e8   :  { %v1741_v14 = vpop.xlane.xlu0 %1740  ;;  %v1871_v33 = vsel %vm1133_vm2, %v1833_v10, 0.0  ;;  %v1803_v46 = vadd.f32 %v1675_v26, %v1563_v50 }
 0x2e9   :  { %v2042_v16 = vpop.eup %2041  ;;  %v1757_v35 = vmax.f32 %v1741_v14, 1e-24  ;;  %1872 = vadd.xlane.f32.xlu0 %v1871_v33 }
 0x2ea   :  { %v1564_v34 = vmul.f32 %v2042_v16, %v2919_v54 }
 0x2eb   :  { %2049 = vrsqrt.f32 %v1757_v35 }
 0x2ec   :  { %v1804_v9 = vadd.f32 %v1676_v62, %v1564_v34 }
 0x2ed   :  { %v2044_v19 = vpop.eup %2043 }
 0x2ee   :  { %v1820_v40 = vsub.f32 %v1804_v9, %v1788_v7  ;;  %v1787_v2 = vmul.f32 %v2044_v19, %v2927_v20  ;;  %v2046_v45 = vpop.eup %2045 }
 0x2ef   :  { %v1565_v44 = vmul.f32 %v2046_v45, %v3130_v23 }
 0x2f0   :  { %v1836_v52 = vand.u32 2147483647, %v1820_v40  ;;  %v1819_v30 = vsub.f32 %v1803_v46, %v1787_v2 }
 0x2f1   :  { %v2048_v21 = vpop.eup %2047 }
 0x2f2   :  { %v1880_v54 = vsel %vm1133_vm2, %v1836_v52, 0.0  ;;  %v1835_v4 = vand.u32 2147483647, %v1819_v30  ;;  %v1677_v36 = vmul.f32 %v2048_v21, %v2938_v8 }
 0x2f3   :  { %1881 = vadd.xlane.f32.xlu1 %v1880_v54 }
 0x2f4   :  { %v1877_v24 = vsel %vm1133_vm2, %v1835_v4, 0.0  ;;  %v1805_v20 = vadd.f32 %v1677_v36, %v1565_v44 }
 0x2f5   :  { %v2050_v28 = vpop.eup %2049  ;;  %1878 = vadd.xlane.f32.xlu0 %v1877_v24 }
 0x2f6   :  { %v1789_v1 = vmul.f32 %v2050_v28, %v3131_v37 }
 0x2f8   :  { %v1821_v49 = vsub.f32 %v1805_v20, %v1789_v1 }
 0x2fa   :  { %v1837_v3 = vand.u32 2147483647, %v1821_v49 }
 0x2fc   :  { %v1883_v29 = vsel %vm1133_vm2, %v1837_v3, 0.0 }
 0x2fd   :  { %1884 = vadd.xlane.f32.xlu0 %v1883_v29 }
 0x308   :  { %v1840_v13 = vpop.xlane.xlu1 %1839 }
 0x310   :  { %v1843_v17 = vpop.xlane.xlu0 %1842 }
 0x314   :  { %v1846_v8 = vpop.xlane.xlu1 %1845 }
 0x31c   :  { %v1849_v57 = vpop.xlane.xlu0 %1848 }
 0x320   :  { %v1852_v43 = vpop.xlane.xlu1 %1851 }
 0x326   :  { %1886 = vxpose.xlu1.b32.start [1/16] (narrow) %v1840_v13, 8 }
 0x328   :  { %v1855_v63 = vpop.xlane.xlu0 %1854 }
 0x32a   :  { %1887 = vxpose.xlu1.b32.cont [2/16] (narrow) %v1843_v17, 8 }
 0x32e   :  { %1888 = vxpose.xlu1.b32.cont [3/16] (narrow) %v1846_v8, 8 }
 0x331   :  { %v1858_v11 = vpop.xlane.xlu1 %1857 }
 0x332   :  { %1889 = vxpose.xlu1.b32.cont [4/16] (narrow) %v1849_v57, 8 }
 0x336   :  { %1890 = vxpose.xlu1.b32.cont [5/16] (narrow) %v1852_v43, 8 }
 0x33a   :  { %1891 = vxpose.xlu1.b32.cont [6/16] (narrow) %v1855_v63, 8 }
 0x33e   :  { %1892 = vxpose.xlu1.b32.cont [7/16] (narrow) %v1858_v11, 8 }
 0x352   :  { %v1861_v38 = vpop.xlane.xlu0 %1860 }
 0x353   :  { %1893 = vxpose.xlu1.b32.cont [8/16] (narrow) %v1861_v38, 8 }
 0x356   :  { %v1864_v60 = vpop.xlane.xlu1 %1863 }
 0x357   :  { %1894 = vxpose.xlu1.b32.cont [9/16] (narrow) %v1864_v60, 8 }
 0x368   :  { %v1870_v56 = vpop.xlane.xlu1 %1869 }
 0x36a   :  { %v1867_v27 = vpop.xlane.xlu0 %1866 }
 0x36b   :  { %1895 = vxpose.xlu1.b32.cont [10/16] (narrow) %v1867_v27, 8 }
 0x36f   :  { %1896 = vxpose.xlu1.b32.cont [11/16] (narrow) %v1870_v56, 8 }
 0x374   :  { %v1876_v42 = vpop.xlane.xlu1 %1875 }
 0x376   :  { %v1873_v12 = vpop.xlane.xlu0 %1872 }
 0x377   :  { %1897 = vxpose.xlu1.b32.cont [12/16] (narrow) %v1873_v12, 8 }
 0x37b   :  { %1898 = vxpose.xlu1.b32.cont [13/16] (narrow) %v1876_v42, 8 }
 0x380   :  { %v1882_v6 = vpop.xlane.xlu1 %1881 }
 0x382   :  { %v1879_v41 = vpop.xlane.xlu0 %1878 }
 0x383   :  { %1899 = vxpose.xlu1.b32.cont [14/16] (narrow) %v1879_v41, 8 }
 0x387   :  { %1900 = vxpose.xlu1.b32.cont [15/16] (narrow) %v1882_v6, 8 }
 0x38a   :  { %v1885_v0 = vpop.xlane.xlu0 %1884 }
 0x38b   :  { %1901 = vxpose.xlu1.b32.end [16/16] (narrow) %v1885_v0, 8 }
 0x3cf   :  { %v1902_v22 = vpop.trf.xlu1 }
 0x3d0   :  { %1918 = vst [vmem:[%s3025_s8] sm:$0x1] %v1902_v22 }

</bundles_post_ra>
